<compile_context>
chip_gen: v6e
topology: v6e:2x2x1
jax: 0.10.0
libtpu: 0.0.40
codegen_flags: <defaults>
</compile_context>

<pallas_src>
import jax
import jax.numpy as jnp
from jax import lax
from jax.experimental import pallas as pl
from jax.experimental.pallas import tpu as pltpu

# ----------------------------- configuration -------------------------------
B = 2                  # batch (toy; wrapper handles any batch)
IMG_C, IMG_H, IMG_W = 3, 16, 16
FLAT = IMG_C * IMG_H * IMG_W          # 768
FC_IN = 2048           # inception_v3 fc.in_features
CLASS_COUNT = 8        # class_count
ADD_DATA_DIM = 8       # len(checkpoint['classes'])
N_LIFT = 2 * FC_IN     # 4096 : [lift1 | lift2] packed along lanes
TN = 1024              # lift column tile streamed per grid step (4 steps)


# ------------------------------ Pallas kernel -------------------------------
def ensemble_kernel(flat_ref, liftq_ref, wfct_ref, bfc_ref, wc_ref, bc_ref,
                    out_ref, pre_acc):
    """One grid step: stream one [FLAT, TN] int8 lift tile, accumulate fc.

    flat  : [B, FLAT]    f32   flattened image (same block every step)
    liftq : [FLAT, TN]   int8  column tile of the packed lift slab
    wfct  : [C+A, TN]    f32   transposed block-diag fc slab, dequant-scale folded
    bfc   : [1, C+A]     f32   [b1 | b2]
    wc    : [C+A, C]     f32   classifier weight
    bc    : [1, C]       f32   classifier bias
    pre_acc scratch [B, C+A] f32  fc accumulator (persists across grid steps)
    """
    j = pl.program_id(0)

    @pl.when(j == 0)
    def _():
        pre_acc[...] = jnp.zeros_like(pre_acc)

    # --- backbone placeholder lift: int8 weights, exact int8->bf16 convert ---
    # (per-column dequant scale is folded into wfct at pack time; positive
    #  scale commutes with ReLU, so relu(x @ (q*s)) @ W == relu(x @ q) @ (s*W)).
    flat_bf = flat_ref[...].astype(jnp.bfloat16)
    q_bf = liftq_ref[...].astype(jnp.float32).astype(jnp.bfloat16)  # exact (|q|<=127)
    raw = jnp.dot(flat_bf, q_bf, preferred_element_type=jnp.float32)  # [B, TN]
    feat = jnp.maximum(raw, 0.0)                                      # f32 ReLU

    # --- fc heads (block-diagonal), lane-dense transposed layout, f32 --------
    pre_acc[...] += lax.dot_general(
        feat, wfct_ref[...],
        dimension_numbers=(((1,), (1,)), ((), ())),     # feat @ wfct.T
        preferred_element_type=jnp.float32)             # [B, C+A]

    # --- final step: relu(cat(x1,x2)) + classifier, all f32 ------------------
    @pl.when(j == pl.num_programs(0) - 1)
    def _():
        cat = jnp.maximum(pre_acc[...] + bfc_ref[...], 0.0)
        out = jnp.dot(cat, wc_ref[...],
                      preferred_element_type=jnp.float32) + bc_ref[...]
        out_ref[...] = out.astype(out_ref.dtype)


def ensemble_fused_pallas(flat, lift_q, wfc_t, bfc, wc, bc, *, tn=TN):
    batch, flat_dim = flat.shape
    n_lift = lift_q.shape[1]
    ca = wfc_t.shape[0]            # class_count + add_data_dim
    c_out = wc.shape[1]
    assert n_lift % tn == 0 and tn % 128 == 0
    n_tiles = n_lift // tn

    cost = pl.CostEstimate(
        flops=2 * batch * flat_dim * n_lift
              + 2 * batch * n_lift * ca
              + 2 * batch * ca * c_out,
        transcendentals=0,
        bytes_accessed=int(lift_q.size                      # int8
                           + 4 * (wfc_t.size + flat.size + bfc.size
                                  + wc.size + bc.size + batch * c_out)),
    )

    grid_spec = pltpu.PrefetchScalarGridSpec(
        num_scalar_prefetch=0,
        grid=(n_tiles,),
        in_specs=[
            pl.BlockSpec((batch, flat_dim), lambda j: (0, 0)),   # flat (resident)
            pl.BlockSpec((flat_dim, tn),    lambda j: (0, j)),   # int8 lift tile
            pl.BlockSpec((ca, tn),          lambda j: (0, j)),   # fc tile (lane-dense)
            pl.BlockSpec((1, ca),           lambda j: (0, 0)),   # bfc
            pl.BlockSpec((ca, c_out),       lambda j: (0, 0)),   # wc
            pl.BlockSpec((1, c_out),        lambda j: (0, 0)),   # bc
        ],
        out_specs=pl.BlockSpec((batch, c_out), lambda j: (0, 0)),
        scratch_shapes=[pltpu.VMEM((batch, ca), jnp.float32)],
    )
    return pl.pallas_call(
        ensemble_kernel,
        out_shape=jax.ShapeDtypeStruct((batch, c_out), jnp.float32),
        grid_spec=grid_spec,
        compiler_params=pltpu.CompilerParams(
            dimension_semantics=("arbitrary",)),
        cost_estimate=cost,
    )(flat, lift_q, wfc_t, bfc, wc, bc)


# --------------------------- model (params + packing) -----------------------
def init_params(key):
    """Raw f32 parameters, laid out [in_features, out_features] (torch W^T)."""
    ks = jax.random.split(key, 8)
    scale = 0.02
    return {
        # placeholder backbone projections (stand-ins for the two inception_v3
        # feature extractors; see TODO(synk) above)
        "lift1": jax.random.normal(ks[0], (FLAT, FC_IN), jnp.float32) * scale,
        "lift2": jax.random.normal(ks[1], (FLAT, FC_IN), jnp.float32) * scale,
        # cnn.fc : Linear(2048, class_count)
        "w1": jax.random.normal(ks[2], (FC_IN, CLASS_COUNT), jnp.float32) * scale,
        "b1": jax.random.normal(ks[3], (1, CLASS_COUNT), jnp.float32) * scale,
        # input_cnn.fc : Linear(2048, add_data_dim)
        "w2": jax.random.normal(ks[4], (FC_IN, ADD_DATA_DIM), jnp.float32) * scale,
        "b2": jax.random.normal(ks[5], (1, ADD_DATA_DIM), jnp.float32) * scale,
        # classifier : Linear(class_count + add_data_dim, class_count)
        "wc": jax.random.normal(ks[6], (CLASS_COUNT + ADD_DATA_DIM, CLASS_COUNT),
                                jnp.float32) * scale,
        "bc": jax.random.normal(ks[7], (1, CLASS_COUNT), jnp.float32) * scale,
    }


def pack_params(params):
    """One-time packing: int8 lift slab + scale-folded, lane-dense fc slab."""
    fc_in = params["w1"].shape[0]
    c = params["w1"].shape[1]          # class_count
    a = params["w2"].shape[1]          # add_data_dim

    # both backbones side-by-side along output lanes -> [768, 4096]
    lift = jnp.concatenate([params["lift1"], params["lift2"]], axis=1)

    # weight-only int8 quantization, per output column (symmetric)
    absmax = jnp.maximum(jnp.max(jnp.abs(lift), axis=0), 1e-8)   # [4096]
    qscale = absmax / 127.0
    lift_q = jnp.clip(jnp.round(lift / qscale), -127, 127).astype(jnp.int8)

    # block-diagonal fc slab [4096, c+a] (zeros kill cross terms exactly),
    # then fold the dequant scale into its rows and store transposed so the
    # kernel operand is lane-dense [c+a, 4096].
    wfc = jnp.zeros((2 * fc_in, c + a), jnp.float32)
    wfc = wfc.at[:fc_in, :c].set(params["w1"])
    wfc = wfc.at[fc_in:, c:].set(params["w2"])
    wfc_t = (wfc * qscale[:, None]).T                            # [c+a, 4096]

    return {
        "lift_q": lift_q,                                        # int8
        "lift_deq": lift_q.astype(jnp.float32) * qscale[None, :],  # ref only
        "wfc_t": wfc_t,                                          # f32
        "bfc": jnp.concatenate([params["b1"], params["b2"]], axis=1),  # f32
        "wc": params["wc"],                                      # f32
        "bc": params["bc"],                                      # f32
    }


def forward(image, packed):
    """EnsembleModel_v2.forward in eval mode (aux branch inactive)."""
    batch = image.shape[0]
    flat = image.reshape(batch, -1)    # NCHW flattened, row-major like torch.view
    return ensemble_fused_pallas(flat, packed["lift_q"], packed["wfc_t"],
                                 packed["bfc"], packed["wc"], packed["bc"])


def forward_reference(image, params, lift):
    """Pure-JAX f32 reference mirroring the torch forward, given a lift slab."""
    batch = image.shape[0]
    flat = image.reshape(batch, -1)
    fc_in = params["w1"].shape[0]
    feat1 = jnp.maximum(flat @ lift[:, :fc_in], 0.0)       # self.cnn backbone
    feat2 = jnp.maximum(flat @ lift[:, fc_in:], 0.0)       # self.input_cnn backbone
    x1 = feat1 @ params["w1"] + params["b1"]               # cnn.fc
    x2 = feat2 @ params["w2"] + params["b2"]               # input_cnn.fc
    x = jnp.concatenate([x1, x2], axis=1)                  # torch.cat((x1, x2), 1)
    x = jnp.maximum(x, 0.0)                                # F.relu
    return x @ params["wc"] + params["bc"]                 # self.classifier


# ---------------------------------- main -------------------------------------
if __name__ == "__main__":
    key = jax.random.PRNGKey(0)
    k_img, k_par = jax.random.split(key)
    image = jax.random.normal(k_img, (B, IMG_C, IMG_H, IMG_W), jnp.float32)

    params = init_params(k_par)
    packed = pack_params(params)

    out = jax.block_until_ready(forward(image, packed))
    assert out.shape == (B, CLASS_COUNT), out.shape

    # (1) kernel math vs a quantization-aware f32 reference (same int8 lift
    #     weights, dequantized) — only bf16 lift-matmul rounding differs.
    ref_q = forward_reference(image, params, packed["lift_deq"])
    err_q = float(jnp.max(jnp.abs(out - ref_q)))
    assert err_q < 1e-2, f"kernel vs quant-aware reference: max abs err {err_q}"

    # (2) end-to-end fidelity vs the original f32 weights (bounds int8 error).
    lift_f32 = jnp.concatenate([params["lift1"], params["lift2"]], axis=1)
    ref_f = forward_reference(image, params, lift_f32)
    err_f = float(jnp.max(jnp.abs(out - ref_f)))
    assert err_f < 5e-2, f"kernel vs f32 reference: max abs err {err_f}"

    print("KERNEL_OK")
</pallas_src>

<mosaic_0001>
module attributes {stable_mosaic.version = 11 : i64} {
  func.func @ensemble_kernel(%arg0: i32, %arg1: memref<2x768xf32, #tpu.memory_space<vmem>>, %arg2: memref<768x1024xi8, #tpu.memory_space<vmem>>, %arg3: memref<16x1024xf32, #tpu.memory_space<vmem>>, %arg4: memref<1x16xf32, #tpu.memory_space<vmem>>, %arg5: memref<16x8xf32, #tpu.memory_space<vmem>>, %arg6: memref<1x8xf32, #tpu.memory_space<vmem>>, %arg7: memref<2x8xf32, #tpu.memory_space<vmem>>, %arg8: memref<2x16xf32, #tpu.memory_space<vmem>>) attributes {dimension_semantics = [#tpu.dimension_semantics<arbitrary>], iteration_bounds = array<i64: 4>, scalar_prefetch = 0 : i64, scratch_operands = 1 : i64, tpu.core_type = #tpu.core_type<tc>, window_params = [{pipeline_mode = #tpu.pipeline_mode<synchronous>, transform_indices = @transform_0, window_bounds = array<i64: 2, 768>}, {transform_indices = @transform_1, window_bounds = array<i64: 768, 1024>}, {transform_indices = @transform_2, window_bounds = array<i64: 16, 1024>}, {pipeline_mode = #tpu.pipeline_mode<synchronous>, transform_indices = @transform_3, window_bounds = array<i64: 1, 16>}, {pipeline_mode = #tpu.pipeline_mode<synchronous>, transform_indices = @transform_4, window_bounds = array<i64: 16, 8>}, {pipeline_mode = #tpu.pipeline_mode<synchronous>, transform_indices = @transform_5, window_bounds = array<i64: 1, 8>}, {pipeline_mode = #tpu.pipeline_mode<synchronous>, transform_indices = @transform_6, window_bounds = array<i64: 2, 8>}]} {
    %c0_i32 = arith.constant 0 : i32
    %0 = arith.cmpi eq, %arg0, %c0_i32 : i32
    %1 = arith.extui %0 : i1 to i32
    %c0_i32_0 = arith.constant 0 : i32
    %2 = arith.cmpi ne, %1, %c0_i32_0 : i32
    scf.if %2 {
      %cst_13 = arith.constant 0.000000e+00 : f32
      %19 = vector.broadcast %cst_13 : f32 to vector<2x16xf32>
      %c0_14 = arith.constant 0 : index
      %c0_15 = arith.constant 0 : index
      %20 = vector.load %arg8[%c0_14, %c0_15] : memref<2x16xf32, #tpu.memory_space<vmem>>, vector<2x16xf32>
      tpu.vector_store %arg8[%c0_14, %c0_15], %19 {strides = array<i32>} : memref<2x16xf32, #tpu.memory_space<vmem>>, vector<2x16xf32>,
    } else {
    }
    %c0 = arith.constant 0 : index
    %c0_1 = arith.constant 0 : index
    %3 = vector.load %arg1[%c0, %c0_1] : memref<2x768xf32, #tpu.memory_space<vmem>>, vector<2x768xf32>
    %4 = arith.truncf %3 : vector<2x768xf32> to vector<2x768xbf16>
    %c0_2 = arith.constant 0 : index
    %c0_3 = arith.constant 0 : index
    %5 = vector.load %arg2[%c0_2, %c0_3] : memref<768x1024xi8, #tpu.memory_space<vmem>>, vector<768x1024xi8>
    %6 = arith.sitofp %5 : vector<768x1024xi8> to vector<768x1024xf32>
    %7 = arith.truncf %6 : vector<768x1024xf32> to vector<768x1024xbf16>
    %cst = arith.constant dense<0.000000e+00> : vector<2x1024xf32>
    %8 = tpu.matmul %4, %7, %cst {dimension_numbers = #tpu.dot_dimension_numbers<[1], [0], [0], [1], [0, 0, 1, 1], [], []>} : vector<2x768xbf16>, vector<768x1024xbf16>, vector<2x1024xf32> -> vector<2x1024xf32>
    %cst_4 = arith.constant 0.000000e+00 : f32
    %9 = vector.broadcast %cst_4 : f32 to vector<2x1024xf32>
    %10 = arith.maximumf %8, %9 : vector<2x1024xf32>
    %c0_5 = arith.constant 0 : index
    %c0_6 = arith.constant 0 : index
    %11 = vector.load %arg8[%c0_5, %c0_6] : memref<2x16xf32, #tpu.memory_space<vmem>>, vector<2x16xf32>
    %c0_7 = arith.constant 0 : index
    %c0_8 = arith.constant 0 : index
    %12 = vector.load %arg3[%c0_7, %c0_8] : memref<16x1024xf32, #tpu.memory_space<vmem>>, vector<16x1024xf32>
    %cst_9 = arith.constant dense<0.000000e+00> : vector<2x16xf32>
    %13 = tpu.matmul %10, %12, %cst_9 {dimension_numbers = #tpu.dot_dimension_numbers<[1], [1], [0], [0], [0, 0, 1, 0], [], []>} : vector<2x1024xf32>, vector<16x1024xf32>, vector<2x16xf32> -> vector<2x16xf32>
    %14 = arith.addf %11, %13 : vector<2x16xf32>
    %c0_10 = arith.constant 0 : index
    %c0_11 = arith.constant 0 : index
    %15 = vector.load %arg8[%c0_10, %c0_11] : memref<2x16xf32, #tpu.memory_space<vmem>>, vector<2x16xf32>
    tpu.vector_store %arg8[%c0_10, %c0_11], %14 {strides = array<i32>} : memref<2x16xf32, #tpu.memory_space<vmem>>, vector<2x16xf32>,
    %c3_i32 = arith.constant 3 : i32
    %16 = arith.cmpi eq, %arg0, %c3_i32 : i32
    %17 = arith.extui %16 : i1 to i32
    %c0_i32_12 = arith.constant 0 : i32
    %18 = arith.cmpi ne, %17, %c0_i32_12 : i32
    scf.if %18 {
      %c0_13 = arith.constant 0 : index
      %c0_14 = arith.constant 0 : index
      %19 = vector.load %arg8[%c0_13, %c0_14] : memref<2x16xf32, #tpu.memory_space<vmem>>, vector<2x16xf32>
      %c0_15 = arith.constant 0 : index
      %c0_16 = arith.constant 0 : index
      %20 = vector.load %arg4[%c0_15, %c0_16] : memref<1x16xf32, #tpu.memory_space<vmem>>, vector<1x16xf32>
      %21 = vector.broadcast %20 : vector<1x16xf32> to vector<2x16xf32>
      %22 = arith.addf %19, %21 : vector<2x16xf32>
      %cst_17 = arith.constant 0.000000e+00 : f32
      %23 = vector.broadcast %cst_17 : f32 to vector<2x16xf32>
      %24 = arith.maximumf %22, %23 : vector<2x16xf32>
      %c0_18 = arith.constant 0 : index
      %c0_19 = arith.constant 0 : index
      %25 = vector.load %arg5[%c0_18, %c0_19] : memref<16x8xf32, #tpu.memory_space<vmem>>, vector<16x8xf32>
      %cst_20 = arith.constant dense<0.000000e+00> : vector<2x8xf32>
      %26 = tpu.matmul %24, %25, %cst_20 {dimension_numbers = #tpu.dot_dimension_numbers<[1], [0], [0], [1], [0, 0, 1, 1], [], []>} : vector<2x16xf32>, vector<16x8xf32>, vector<2x8xf32> -> vector<2x8xf32>
      %c0_21 = arith.constant 0 : index
      %c0_22 = arith.constant 0 : index
      %27 = vector.load %arg6[%c0_21, %c0_22] : memref<1x8xf32, #tpu.memory_space<vmem>>, vector<1x8xf32>
      %28 = vector.broadcast %27 : vector<1x8xf32> to vector<2x8xf32>
      %29 = arith.addf %26, %28 : vector<2x8xf32>
      %c0_23 = arith.constant 0 : index
      %c0_24 = arith.constant 0 : index
      %30 = vector.load %arg7[%c0_23, %c0_24] : memref<2x8xf32, #tpu.memory_space<vmem>>, vector<2x8xf32>
      tpu.vector_store %arg7[%c0_23, %c0_24], %29 {strides = array<i32>} : memref<2x8xf32, #tpu.memory_space<vmem>>, vector<2x8xf32>,
    } else {
    }
    return
  }
  func.func @transform_0(%arg0: i32) -> (i32, i32) {
    %c0_i32 = arith.constant 0 : i32
    %c0_i32_0 = arith.constant 0 : i32
    %c0_i32_1 = arith.constant 0 : i32
    return %c0_i32, %c0_i32_0 : i32, i32
  }
  func.func @transform_1(%arg0: i32) -> (i32, i32) {
    %c0_i32 = arith.constant 0 : i32
    %c0_i32_0 = arith.constant 0 : i32
    return %c0_i32, %arg0 : i32, i32
  }
  func.func @transform_2(%arg0: i32) -> (i32, i32) {
    %c0_i32 = arith.constant 0 : i32
    %c0_i32_0 = arith.constant 0 : i32
    return %c0_i32, %arg0 : i32, i32
  }
  func.func @transform_3(%arg0: i32) -> (i32, i32) {
    %c0_i32 = arith.constant 0 : i32
    %c0_i32_0 = arith.constant 0 : i32
    %c0_i32_1 = arith.constant 0 : i32
    return %c0_i32, %c0_i32_0 : i32, i32
  }
  func.func @transform_4(%arg0: i32) -> (i32, i32) {
    %c0_i32 = arith.constant 0 : i32
    %c0_i32_0 = arith.constant 0 : i32
    %c0_i32_1 = arith.constant 0 : i32
    return %c0_i32, %c0_i32_0 : i32, i32
  }
  func.func @transform_5(%arg0: i32) -> (i32, i32) {
    %c0_i32 = arith.constant 0 : i32
    %c0_i32_0 = arith.constant 0 : i32
    %c0_i32_1 = arith.constant 0 : i32
    return %c0_i32, %c0_i32_0 : i32, i32
  }
  func.func @transform_6(%arg0: i32) -> (i32, i32) {
    %c0_i32 = arith.constant 0 : i32
    %c0_i32_0 = arith.constant 0 : i32
    %c0_i32_1 = arith.constant 0 : i32
    return %c0_i32, %c0_i32_0 : i32, i32
  }
}

</mosaic_0001>

<bundles_post_ra>
// kernel: tpu_custom_call.1
= control target key start
LH: loop header
LB: loop body
LE: loop exit
PB: predicated region body
PF: predicated region fallthrough
CT: control target
= control target key end

     0   :  { %s2856_s0 = inlined_call_operand.hbm [shape: f32[2,768], index: 0, kind: input, shape index: {}]   ;;  %s2857_s1 = inlined_call_operand.hbm [shape: s8[768,4096], index: 1, kind: input, shape index: {}]   ;;  %s2858_s2 = inlined_call_operand.hbm [shape: f32[16,4096], index: 2, kind: input, shape index: {}]   ;;  %s2859_s3 = inlined_call_operand.hbm [shape: f32[1,16], index: 3, kind: input, shape index: {}]   ;;  %s2860_s4 = inlined_call_operand.vmem [shape: f32[16,8], index: 4, kind: input, shape index: {}]   ;;  %s2861_s5 = inlined_call_operand.hbm [shape: f32[1,8], index: 5, kind: input, shape index: {}]   ;;  %s2862_s6 = inlined_call_operand.hbm [shape: f32[2,8], index: 6, kind: output, shape index: {}]  }
   0x1   :  { %2868 = sst [smem:[#allocation19_spill]] %s2857_s1 }
   0x2   :  { %2869 = sst [smem:[#allocation20_spill]] %s2859_s3 }
   0x3   :  { %11 = vsyncpa [#allocation4], 0 }
   0x4   :  { %12 = vsyncpa [#allocation7], 0 }
   0x5   :  { %14 = vsyncpa [#allocation7 + $0x1], 0 }
   0x6   :  { %15 = vsyncpa [#allocation10], 0 }
   0x7   :  { %16 = vsyncpa [#allocation5], 0  ;;  %s2349_s21 = smov 0   ;;  %s2351_s22 = smov 0  }
   0x8   :  { %s2353_s23 = smov 0   ;;  %s2355_s24 = smov 0  }
   0x9 LB: > { %2870 = sst [smem:[#allocation17_spill]] %s2295_s23  ;;  %s2368_s25 = sadd.s32 4294967295, %s2299_s24   ;;  %s2299_s24 = sphi %s2355_s24, %s2892_s24   ;;  %s2295_s23 = sphi %s2353_s23, %s2889_s23   ;;  %s2291_s22 = sphi %s2351_s22, %s2891_s22   ;;  %s2287_s21 = sphi %s2349_s21, %s2890_s21  }
   0xa   : > { %s2371_s26 = sadd.s32 1, %s2299_s24   ;;  %s50_s28 = sadd.s32 1, %s2295_s23 }
   0xb   : > { %s47_s27 = ssub.s32 %s2299_s24, %s2371_s26  ;;  %p57_p1 = scmp.ne.s32.totalorder %s2295_s23, %s2291_s22 }
   0xc   : > { %p48_p0 = scmp.eq.s32.totalorder %s47_s27, 0  ;;  %p58_p2 = scmp.eq.s32.totalorder %s2299_s24, 0 }
   0xd   : > { %p63_p3 = scmp.ne.s32.totalorder %s2291_s22, %s2287_s21  ;;  %p2863_p5 = scmp.eq.s32.totalorder %s2368_s25, 0 }
   0xe   : > { %s2381_s29 = scalar_select %p48_p0, %s2295_s23, %s50_s28  }
   0xf   : > { %p2383_p4 = por %p58_p2, %p57_p1  ;;  %p1966_p6 = scmp.ge.s32.totalorder %s2299_s24, 1 }
  0x10   : > { %2871 = sst [smem:[#allocation18_spill]] %s2381_s29  ;;  %p184_p7 = scmp.lt.s32.totalorder %s2299_s24, 5 }
  0x11   : > { %p2392_p8 = por %p2863_p5, %p63_p3  ;;  %s2301_s9 = smov [#allocation9]  }
  0x12   : > { %p2397_p10 = pnand %p1966_p6, %p184_p7  ;;  %s208_s10 = sshll.u32 %s2301_s9, 4  ;;  %s209_s10 = int_to_ptr.vmem [resolvable:$true] %s208_s10 }
  0x13   : > { %s2873_s7 = scalar_select %p2392_p8, 1, 0 }
  0x14   : > { %s2874_s8 = scalar_select %p2397_p10, 1, 0 }
  0x15   : > { %p2025_p11 = pneg %p2397_p10  ;;  %p2045_p12 = scmp.lt.s32.totalorder %s2299_s24, 4 }
  0x16   : > { %s233_s11 = sand.u32 1, %s2299_s24   ;;  %s235_s14 = sand.u32 1, %s2295_s23  }
  0x17   : > { %p2407_p13 = pnand %p2025_p11, %p2863_p5  ;;  %p2413_p0 = pnand %p2045_p12, %p2383_p4 }
  0x18   : > { %s2003_s15 = smul.u32 1536, %s235_s14  ;;  %s2106_s16 = scalar_lea.vmem %s209_s10, 16 }
  0x19   : > { %p2864_p1 = pneg %p2407_p13  ;;  %p2107_p2 = scmp.ne.s32.totalorder %s209_s10, %s2106_s16 }
  0x1a   : > { %s2113_s17 = scalar_lea.vmem %s209_s10, 32  ;;  %p2114_p7 = scmp.lt.s32.totalorder %s209_s10, %s209_s10 }
  0x1b   : > { %p2109_p3 = pnand %p2107_p2, %p2864_p1  ;;  %p2115_p11 = scmp.lt.s32.totalorder %s2113_s17, %s2106_s16 }
  0x1d   : > { %p2110_p6 = pneg %p2109_p3  ;;  %p2116_p9 = por %p2115_p11, %p2114_p7 }
  0x1f   : > { %p2117_p5 = pnand %p2116_p9, %p2110_p6 }
  0x21   : > { %2120 = shalt.err (!%p2117_p5)
}
  0x22   : > { %s2877_s3 = sld [smem:[#allocation20_spill]]  ;;  %s1991_s20 = sshll.u32 %s2299_s24, 10 }
  0x23   : > { %s237_s21 = scalar_lea.vmem [#allocation6], %s2003_s15  ;;  %s2878_s1 = sld [smem:[#allocation19_spill]] }
  0x24   : > { %s244_s27 = sshll.u32 %s237_s21, 4  ;;  %s2438_s16 = sshll.u32 %s235_s14, 7  ;;  %s2436_s27 = int_to_ptr.vmem [resolvable:$true] %s244_s27 }
  0x25   : > { %s2440_s17 = scalar_lea.sflag [#allocation7], %s233_s11  ;;  %p2123_p5 = pneg %p2413_p0 }
  0x28   : > { %2031 = dma.hbm_to_vmem [thread:$0]  (!%p2407_p13), %s2877_s3, 16, %s209_s10, [#allocation10]  }
  0x29   : > { %s2434_s9 = scalar_lea.hbm %s2878_s1, %s1991_s20  ;;  %s2126_s19 = scalar_lea.hbm %s2878_s1, 98304 }
  0x2a   : > { %s2121_s18 = scalar_lea.hbm %s2434_s9, 24576  ;;  %p2127_p2 = scmp.lt.s32.totalorder %s2434_s9, %s2878_s1 }
  0x2b   : > { %p2122_p4 = scmp.ne.s32.totalorder %s2434_s9, %s2121_s18  ;;  %p2128_p3 = scmp.lt.s32.totalorder %s2126_s19, %s2121_s18 }
  0x2d   : > { %p2124_p9 = pnand %p2123_p5, %p2122_p4  ;;  %p2129_p6 = por %p2128_p3, %p2127_p2 }
  0x2f   : > { %p2125_p12 = pneg %p2124_p9 }
  0x31   : > { %p2130_p7 = pnand %p2129_p6, %p2125_p12 }
  0x33   : > { %2133 = shalt.err (!%p2130_p7)
}
  0x34   : > { %s2134_s11 = scalar_lea.vmem %s2436_s27, 24576  ;;  %s2302_s14 = smov [#allocation6]  }
  0x35   : > { %p2135_p11 = scmp.ne.s32.totalorder %s2436_s27, %s2134_s11  ;;  %s2139_s30 = sshll.u32 %s2302_s14, 4  ;;  %s2140_s30 = int_to_ptr.vmem [resolvable:$false] %s2139_s30 }
  0x36   : > { %s2141_s10 = scalar_lea.vmem %s2140_s30, 49152  ;;  %p2142_p1 = scmp.lt.s32.totalorder %s2436_s27, %s2140_s30 }
  0x37   : > { %p2137_p4 = pnand %p2135_p11, %p2123_p5  ;;  %p2143_p8 = scmp.lt.s32.totalorder %s2141_s10, %s2134_s11 }
  0x39   : > { %p2138_p9 = pneg %p2137_p4  ;;  %p2144_p10 = por %p2143_p8, %p2142_p1 }
  0x3b   : > { %p2145_p2 = pnand %p2144_p10, %p2138_p9 }
  0x3d   : > { %2148 = shalt.err (!%p2145_p2)
}
  0x3e   : > { %s2303_s18 = smov 4096   ;;  %s2304_s15 = smov 1024  }
  0x3f   : > { %s2305_s19 = smov 64   ;;  %s2475_s11 = scalar_lea.hbm %s2858_s2, %s1991_s20 }
  0x40   : > { %2038 = dma.hbm_to_vmem [thread:$0]  (!%p2413_p0), %s2434_s9, 24576, %s2436_s27, %s2440_s17, %s2303_s18, %s2304_s15, %s2305_s19  }
  0x41   : > { %s258_s14 = scalar_lea.vmem [#allocation8], %s2438_s16  ;;  %s2306_s10 = smov [#allocation3]  }
  0x42   : > { %s265_s30 = sshll.u32 %s258_s14, 4  ;;  %s197_s1 = sshll.u32 %s2306_s10, 4  ;;  %s198_s1 = int_to_ptr.vmem [resolvable:$true] %s197_s1  ;;  %s2486_s30 = int_to_ptr.vmem [resolvable:$true] %s265_s30 }
  0x43   : > { %s2307_s3 = smov [#allocation11]   ;;  %s2160_s23 = scalar_lea.vmem %s198_s1, 192 }
  0x44   : > { %s222_s29 = sshll.u32 %s2307_s3, 4  ;;  %p2161_p8 = scmp.ne.s32.totalorder %s198_s1, %s2160_s23  ;;  %s223_s29 = int_to_ptr.vmem [resolvable:$true] %s222_s29 }
  0x45   : > { %p2879_p10 = pneg %p2407_p13  ;;  %p2168_p3 = scmp.lt.s32.totalorder %s198_s1, %s198_s1 }
  0x46   : > { %p2169_p6 = scmp.lt.s32.totalorder %s2160_s23, %s2160_s23 }
  0x47   : > { %p2163_p1 = pnand %p2161_p8, %p2879_p10 }
  0x48   : > { %p2170_p7 = por %p2169_p6, %p2168_p3 }
  0x49   : > { %p2164_p12 = pneg %p2163_p1 }
  0x4b   : > { %p2171_p11 = pnand %p2170_p7, %p2164_p12 }
  0x4d   : > { %2174 = shalt.err (!%p2171_p11)
}
  0x4e   : > { %2028 = dma.hbm_to_vmem [thread:$0]  (!%p2407_p13), %s2856_s0, 192, %s198_s1, [#allocation4]  }
  0x4f   : > { %s2186_s3 = scalar_lea.vmem %s223_s29, 16  ;;  %p2880_p9 = pmov %p2879_p10 }
  0x50   : > { %p2187_p4 = scmp.ne.s32.totalorder %s223_s29, %s2186_s3  ;;  %s2193_s23 = scalar_lea.vmem %s223_s29, 32 }
  0x51   : > { %p2194_p10 = scmp.lt.s32.totalorder %s223_s29, %s223_s29  ;;  %p2195_p1 = scmp.lt.s32.totalorder %s2193_s23, %s2186_s3 }
  0x52   : > { %p2189_p2 = pnand %p2187_p4, %p2880_p9 }
  0x53   : > { %p2196_p12 = por %p2195_p1, %p2194_p10 }
  0x54   : > { %p2190_p8 = pneg %p2189_p2 }
  0x56   : > { %p2197_p3 = pnand %p2196_p12, %p2190_p8 }
  0x58   : > { %2200 = shalt.err (!%p2197_p3)
}
  0x59   : > { %2034 = dma.hbm_to_vmem [thread:$0]  (!%p2407_p13), %s2861_s5, 16, %s223_s29, [#allocation10]  }
  0x5a   : > { %s2201_s1 = scalar_lea.hbm %s2475_s11, 2048  ;;  %s2206_s28 = scalar_lea.hbm %s2858_s2, 8192 }
  0x5b   : > { %p2202_p6 = scmp.ne.s32.totalorder %s2475_s11, %s2201_s1  ;;  %p2207_p4 = scmp.lt.s32.totalorder %s2475_s11, %s2858_s2 }
  0x5c   : > { %p2208_p9 = scmp.lt.s32.totalorder %s2206_s28, %s2201_s1 }
  0x5d   : > { %p2204_p7 = pnand %p2202_p6, %p2123_p5 }
  0x5e   : > { %p2209_p2 = por %p2208_p9, %p2207_p4 }
  0x5f   : > { %p2205_p11 = pneg %p2204_p7 }
  0x61   : > { %p2210_p8 = pnand %p2209_p2, %p2205_p11 }
  0x63   : > { %2213 = shalt.err (!%p2210_p8)
}
  0x64   : > { %s2214_s29 = scalar_lea.vmem %s2486_s30, 2048  ;;  %s2308_s10 = smov [#allocation8]  }
  0x65   : > { %p2215_p13 = scmp.ne.s32.totalorder %s2486_s30, %s2214_s29  ;;  %s2219_s24 = sshll.u32 %s2308_s10, 4  ;;  %s2220_s24 = int_to_ptr.vmem [resolvable:$false] %s2219_s24 }
  0x66   : > { %s2221_s20 = scalar_lea.vmem %s2220_s24, 4096  ;;  %p2222_p12 = scmp.lt.s32.totalorder %s2486_s30, %s2220_s24 }
  0x67   : > { %p2217_p10 = pnand %p2215_p13, %p2123_p5  ;;  %p2223_p3 = scmp.lt.s32.totalorder %s2221_s20, %s2214_s29 }
  0x69   : > { %p2218_p1 = pneg %p2217_p10  ;;  %p2224_p6 = por %p2223_p3, %p2222_p12 }
  0x6b   : > { %p2225_p7 = pnand %p2224_p6, %p2218_p1 }
  0x6d   : > { %2228 = shalt.err (!%p2225_p7)
}
  0x6e   : > { %2041 = dma.hbm_to_vmem [thread:$0]  (!%p2413_p0), %s2475_s11, 2048, %s2486_s30, %s2440_s17, %s2303_s18, %s2304_s15, %s2305_s19  }
  0x6f   : > { %p2881_p5 = scmp.ne.s32.totalorder %s2874_s8, 0 }
  0x70   : > { %p2882_p11 = scmp.eq.s32.totalorder (!%p2881_p5), %s2368_s25, 0 }
  0x71   : > { %277 = sbr.rel (%p2881_p5) target bundleno = 1145 (0x479), region = 44 }
  0x76   : > { %2270 = dma.done.wait (%p2882_p11), [#allocation4], 192   ;;  %p2883_p4 = pmov %p2882_p11 }
  0x77   : > { %s283_s13 = sand.u32 1, %s2368_s25   ;;  %s285_s3 = sand.u32 1, %s2291_s22  }
  0x78   : > { %2272 = vsyncadd (%p2883_p4), [#allocation4], 4294967104  ;;  %s2004_s23 = smul.u32 1536, %s285_s3  ;;  %s284_s27 = scalar_lea.sflag [#allocation7], %s283_s13 }
  0x79   : > { %p2884_p9 = scmp.ne.s32.totalorder %s2873_s7, 0 }
  0x7a   : > { %s2530_s9 = scalar_lea.vmem [#allocation6], %s2004_s23 }
  0x7b   : > { %2274 = dma.done.wait (%p2884_p9), %s284_s27, 26624  }
  0x7c   : > { %2276 = vsyncadd (%p2884_p9), %s284_s27, 4294940672  ;;  %s1978_s8 = sshll.u32 %s285_s3, 7  ;;  %p2885_p0 = pmov %p2883_p4 }
  0x7d   : > { %s2536_s17 = scalar_lea.vmem [#allocation8], %s1978_s8 }
  0x7e   : > { %2278 = dma.done.wait (%p2885_p0), [#allocation10], 32   ;;  %p2886_p2 = pmov %p2885_p0 }
  0x7f   : > { %p2887_p8 = scmp.ne.s32.totalorder %s2368_s25, 0 }
  0x80   : > { %2280 = vsyncadd (%p2886_p2), [#allocation10], 4294967264 }
  0x81   : > { %338 = sbr.rel (%p2887_p8) target bundleno = 136 (0x88), region = 68 }
  0x86   : > { %vm339_vm0 = vcmask 123904   ;;  %v2309_v0 = vmov 0.0  }
  0x87   : > { %340 = vst.msk [vmem:[#allocation2] sm:$0x3] %vm339_vm0, %v2309_v0 }
  0x88 PF: > { %v407_v1 = vld [vmem:[%s2530_s9 + $0xc8] sm:$0xff]  ;;  %v406_v3 = vld [vmem:[%s2530_s9 + $0xc0] sm:$0xff]  ;;  %v349_v31 = vlaneseq  ;;  %v341_v34 = vld [vmem:[#allocation3] sm:$0xff]  ;;  %v2310_v37 = vmov 1983009808   ;;  %vm1756_vm1 = vcmask 123904  }
  0x89   : > { %v471_v2 = vld [vmem:[%s2530_s9 + $0x2c8] sm:$0xff]  ;;  %v623_v4 = vunpack.c.l.s8.bf16 %v407_v1  ;;  %v631_v5 = vunpack.c.h.s8.bf16 %v407_v1  ;;  %v470_v8 = vld [vmem:[%s2530_s9 + $0x2c0] sm:$0xff]  ;;  %v630_v9 = vunpack.c.h.s8.bf16 %v406_v3  ;;  %v622_v13 = vunpack.c.l.s8.bf16 %v406_v3  ;;  %p1983_p13 = scmp.ne.s32.totalorder %s2368_s25, 3 }
  0x8a   : > { %v751_v6 = vunpack.c.l.s8.bf16 %v471_v2  ;;  %v759_v7 = vunpack.c.h.s8.bf16 %v471_v2  ;;  %v758_v10 = vunpack.c.h.s8.bf16 %v470_v8  ;;  %v399_v11 = vld [vmem:[%s2530_s9 + $0x88] sm:$0xff]  ;;  %v750_v14 = vunpack.c.l.s8.bf16 %v470_v8  ;;  %v398_v17 = vld [vmem:[%s2530_s9 + $0x80] sm:$0xff] }
  0x8b   : > { %v463_v12 = vld [vmem:[%s2530_s9 + $0x288] sm:$0xff]  ;;  %958 = vmatprep.subr.bf16.mxu0 %v631_v5  ;;  %v615_v15 = vunpack.c.h.s8.bf16 %v399_v11  ;;  %v462_v18 = vld [vmem:[%s2530_s9 + $0x280] sm:$0xff]  ;;  %v614_v19 = vunpack.c.h.s8.bf16 %v398_v17  ;;  %v607_v21 = vunpack.c.l.s8.bf16 %v399_v11  ;;  %v606_v25 = vunpack.c.l.s8.bf16 %v398_v17 }
  0x8c   : > { %999 = vmatprep.subr.bf16.mxu1 %v759_v7  ;;  %959 = vmatpush1.bf16.msra.mxu0 %v630_v9  ;;  %v743_v16 = vunpack.c.h.s8.bf16 %v463_v12  ;;  %v742_v20 = vunpack.c.h.s8.bf16 %v462_v18  ;;  %v735_v22 = vunpack.c.l.s8.bf16 %v463_v12  ;;  %v391_v23 = vld [vmem:[%s2530_s9 + $0x48] sm:$0xff]  ;;  %v734_v26 = vunpack.c.l.s8.bf16 %v462_v18  ;;  %v390_v29 = vld [vmem:[%s2530_s9 + $0x40] sm:$0xff] }
  0x8d   : > { %1000 = vmatpush1.bf16.msra.mxu1 %v758_v10  ;;  %960 = vmatprep.subr.bf16.mxu0 %v623_v4  ;;  %v455_v24 = vld [vmem:[%s2530_s9 + $0x248] sm:$0xff]  ;;  %v599_v27 = vunpack.c.h.s8.bf16 %v391_v23  ;;  %v454_v30 = vld [vmem:[%s2530_s9 + $0x240] sm:$0xff]  ;;  %v598_v32 = vunpack.c.h.s8.bf16 %v390_v29  ;;  %v591_v35 = vunpack.c.l.s8.bf16 %v391_v23  ;;  %v347_v38 = vunpack.c.l.s4 %v2310_v37 }
  0x8e   : > { %1001 = vmatprep.subr.bf16.mxu1 %v751_v6  ;;  %v727_v28 = vunpack.c.h.s8.bf16 %v455_v24  ;;  %v726_v33 = vunpack.c.h.s8.bf16 %v454_v30  ;;  %v719_v36 = vunpack.c.l.s8.bf16 %v455_v24  ;;  %v350_v39 = vshrl.u32 %v349_v31, 7  ;;  %v383_v40 = vld [vmem:[%s2530_s9 + $0x8] sm:$0xff]  ;;  %v382_v48 = vld [vmem:[%s2530_s9] sm:$0xff] }
  0x8f   : > { %v447_v41 = vld [vmem:[%s2530_s9 + $0x208] sm:$0xff]  ;;  %v348_v42 = vunpack.c.0.s8 %v347_v38  ;;  %v345_v43 = vcombine.high %v341_v34, %v341_v34  ;;  %v590_v44 = vunpack.c.l.s8.bf16 %v390_v29  ;;  %v718_v45 = vunpack.c.l.s8.bf16 %v454_v30  ;;  %v446_v49 = vld [vmem:[%s2530_s9 + $0x200] sm:$0xff] }
  0x90   : > { %961 = vmatpush1.bf16.msra.mxu0 %v622_v13  ;;  %v583_v46 = vunpack.c.h.s8.bf16 %v383_v40  ;;  %v711_v47 = vunpack.c.h.s8.bf16 %v447_v41  ;;  %v582_v53 = vunpack.c.h.s8.bf16 %v382_v48  ;;  %v710_v54 = vunpack.c.h.s8.bf16 %v446_v49  ;;  %v439_v59 = vld [vmem:[%s2530_s9 + $0x1c8] sm:$0xff]  ;;  %v438_v3 = vld [vmem:[%s2530_s9 + $0x1c0] sm:$0xff] }
  0x91   : > { %1002 = vmatpush1.bf16.msra.mxu1 %v750_v14  ;;  %962 = vmatprep.subr.bf16.mxu0 %v615_v15  ;;  %v351_v50 = vsub.s32 %v348_v42, %v350_v39  ;;  %v575_v55 = vunpack.c.l.s8.bf16 %v383_v40  ;;  %v703_v56 = vunpack.c.l.s8.bf16 %v447_v41  ;;  %v503_v60 = vld [vmem:[%s2530_s9 + $0x3c8] sm:$0xff]  ;;  %v574_v63 = vunpack.c.l.s8.bf16 %v382_v48  ;;  %v502_v4 = vld [vmem:[%s2530_s9 + $0x3c0] sm:$0xff] }
  0x92   : > { %1003 = vmatprep.subr.bf16.mxu1 %v743_v16  ;;  %v702_v0 = vunpack.c.l.s8.bf16 %v446_v49  ;;  %v695_v1 = vunpack.c.h.s8.bf16 %v439_v59  ;;  %v823_v2 = vunpack.c.h.s8.bf16 %v503_v60  ;;  %v694_v5 = vunpack.c.h.s8.bf16 %v438_v3  ;;  %v431_v9 = vld [vmem:[%s2530_s9 + $0x188] sm:$0xff]  ;;  %v430_v15 = vld [vmem:[%s2530_s9 + $0x180] sm:$0xff] }
  0x93   : > { %v2560_v51 = vrot.slane %v341_v34, %v351_v50  ;;  %v2562_v52 = vrot.slane %v345_v43, %v351_v50  ;;  %v822_v6 = vunpack.c.h.s8.bf16 %v502_v4  ;;  %v687_v7 = vunpack.c.l.s8.bf16 %v439_v59  ;;  %v495_v10 = vld [vmem:[%s2530_s9 + $0x388] sm:$0xff]  ;;  %v494_v16 = vld [vmem:[%s2530_s9 + $0x380] sm:$0xff] }
  0x94   : > { %963 = vmatpush1.bf16.msra.mxu0 %v614_v19  ;;  %v815_v8 = vunpack.c.l.s8.bf16 %v503_v60  ;;  %v686_v11 = vunpack.c.l.s8.bf16 %v438_v3  ;;  %v814_v12 = vunpack.c.l.s8.bf16 %v502_v4  ;;  %v679_v13 = vunpack.c.h.s8.bf16 %v431_v9  ;;  %v479_v34 = vld [vmem:[%s2530_s9 + $0x308] sm:$0xff]  ;;  %v414_v39 = vld [vmem:[%s2530_s9 + $0x100] sm:$0xff] }
  0x95   : > { %1004 = vmatpush1.bf16.msra.mxu1 %v742_v20  ;;  %964 = vmatprep.subr.bf16.mxu0 %v607_v21  ;;  %v360_v57 = vcombine.high %v2560_v51, %v2560_v51  ;;  %v361_v58 = vcombine.high %v2562_v52, %v2562_v52  ;;  %v807_v14 = vunpack.c.h.s8.bf16 %v495_v10  ;;  %v678_v17 = vunpack.c.h.s8.bf16 %v430_v15  ;;  %v423_v21 = vld [vmem:[%s2530_s9 + $0x148] sm:$0xff]  ;;  %v478_v40 = vld [vmem:[%s2530_s9 + $0x300] sm:$0xff] }
  0x96   : > { %1005 = vmatprep.subr.bf16.mxu1 %v735_v22  ;;  %v806_v18 = vunpack.c.h.s8.bf16 %v494_v16  ;;  %v671_v19 = vunpack.c.l.s8.bf16 %v431_v9  ;;  %v799_v20 = vunpack.c.l.s8.bf16 %v495_v10  ;;  %v487_v22 = vld [vmem:[%s2530_s9 + $0x348] sm:$0xff]  ;;  %v670_v23 = vunpack.c.l.s8.bf16 %v430_v15 }
  0x97   : > { %v2570_v61 = vpack.c.bf16 %v360_v57, %v360_v57  ;;  %v2572_v62 = vpack.c.bf16 %v361_v58, %v361_v58  ;;  %v798_v24 = vunpack.c.l.s8.bf16 %v494_v16  ;;  %v655_v31 = vunpack.c.l.s8.bf16 %v423_v21 }
  0x98   : > { %965 = vmatpush1.bf16.msra.mxu0 %v606_v25  ;;  %v663_v25 = vunpack.c.h.s8.bf16 %v423_v21  ;;  %v775_v38 = vunpack.c.h.s8.bf16 %v479_v34  ;;  %v646_v41 = vunpack.c.h.s8.bf16 %v414_v39  ;;  %v774_v42 = vunpack.c.h.s8.bf16 %v478_v40 }
  0x99   : > { %1006 = vmatpush1.bf16.msra.mxu1 %v734_v26  ;;  %966 = vmatprep.subr.bf16.mxu0 %v599_v27  ;;  %v791_v26 = vunpack.c.h.s8.bf16 %v487_v22  ;;  %v422_v27 = vld [vmem:[%s2530_s9 + $0x140] sm:$0xff]  ;;  %v638_v48 = vunpack.c.l.s8.bf16 %v414_v39  ;;  %v766_v49 = vunpack.c.l.s8.bf16 %v478_v40  ;;  %v2600_v57 = vpack.c.bf16 %v2560_v51, %v2560_v51 }
  0x9a   : > { %1007 = vmatprep.subr.bf16.mxu1 %v727_v28  ;;  %990 = vmatprep.mubr.bf16.mxu0 %v2570_v61  ;;  %v486_v28 = vld [vmem:[%s2530_s9 + $0x340] sm:$0xff]  ;;  %v662_v29 = vunpack.c.h.s8.bf16 %v422_v27  ;;  %v2604_v58 = vpack.c.bf16 %v2562_v52, %v2562_v52 }
  0x9b   : > { %1031 = vmatprep.mubr.bf16.mxu1 %v2572_v62  ;;  %v790_v30 = vunpack.c.h.s8.bf16 %v486_v28 }
  0x9c   : > { %967 = vmatpush1.bf16.msra.mxu0 %v598_v32  ;;  %v783_v32 = vunpack.c.l.s8.bf16 %v487_v22 }
  0x9d   : > { %1008 = vmatpush1.bf16.msra.mxu1 %v726_v33  ;;  %968 = vmatprep.subr.bf16.mxu0 %v591_v35  ;;  %v415_v33 = vld [vmem:[%s2530_s9 + $0x108] sm:$0xff]  ;;  %v654_v35 = vunpack.c.l.s8.bf16 %v422_v27 }
  0x9e   : > { %1009 = vmatprep.subr.bf16.mxu1 %v719_v36  ;;  %v782_v36 = vunpack.c.l.s8.bf16 %v486_v28  ;;  %v647_v37 = vunpack.c.h.s8.bf16 %v415_v33  ;;  %v639_v43 = vunpack.c.l.s8.bf16 %v415_v33 }
  0xa0   : > { %969 = vmatpush1.bf16.msra.mxu0 %v590_v44  ;;  %v767_v44 = vunpack.c.l.s8.bf16 %v479_v34 }
  0xa1   : > { %1010 = vmatpush1.bf16.msra.mxu1 %v718_v45  ;;  %970 = vmatprep.subr.bf16.mxu0 %v583_v46  ;;  %v535_v45 = vld [vmem:[%s2530_s9 + $0x4c8] sm:$0xff]  ;;  %v409_v46 = vld [vmem:[%s2530_s9 + $0xd8] sm:$0xff] }
  0xa2   : > { %1011 = vmatprep.subr.bf16.mxu1 %v711_v47  ;;  %v2592_v47 = vld.sshfl [vmem:[#allocation3 + $0x8] sm:$0x33 pattern:$0x76325410]  ;;  %v887_v50 = vunpack.c.h.s8.bf16 %v535_v45 }
  0xa4   : > { %971 = vmatpush1.bf16.msra.mxu0 %v582_v53  ;;  %v633_v53 = vunpack.c.h.s8.bf16 %v409_v46 }
  0xa5   : > { %1012 = vmatpush1.bf16.msra.mxu1 %v710_v54  ;;  %972 = vmatprep.subr.bf16.mxu0 %v575_v55  ;;  %v534_v54 = vld [vmem:[%s2530_s9 + $0x4c0] sm:$0xff]  ;;  %v408_v55 = vld [vmem:[%s2530_s9 + $0xd0] sm:$0xff] }
  0xa6   : > { %1013 = vmatprep.subr.bf16.mxu1 %v703_v56  ;;  %v369_v56 = vcombine.high %v2592_v47, %v2592_v47  ;;  %v886_v59 = vunpack.c.h.s8.bf16 %v534_v54  ;;  %v632_v60 = vunpack.c.h.s8.bf16 %v408_v55  ;;  %v878_v51 = vunpack.c.l.s8.bf16 %v534_v54 }
  0xa7   : > { %v624_v52 = vunpack.c.l.s8.bf16 %v408_v55 }
  0xa8   : > { %973 = vmatpush1.bf16.msra.mxu0 %v574_v63  ;;  %v879_v63 = vunpack.c.l.s8.bf16 %v535_v45  ;;  %v2608_v3 = vpack.c.bf16 %v369_v56, %v369_v56 }
  0xa9   : > { %1014 = vmatpush1.bf16.msra.mxu1 %v702_v0  ;;  %974 = vmatprep.subr.bf16.mxu0 %v695_v1  ;;  %v625_v0 = vunpack.c.l.s8.bf16 %v409_v46  ;;  %v527_v1 = vld [vmem:[%s2530_s9 + $0x488] sm:$0xff] }
  0xaa   : > { %1015 = vmatprep.subr.bf16.mxu1 %v823_v2  ;;  %v401_v2 = vld [vmem:[%s2530_s9 + $0x98] sm:$0xff]  ;;  %v871_v4 = vunpack.c.h.s8.bf16 %v527_v1  ;;  %v863_v10 = vunpack.c.l.s8.bf16 %v527_v1 }
  0xac   : > { %975 = vmatpush2.bf16.msra.mxu0 %v694_v5  ;;  %v617_v5 = vunpack.c.h.s8.bf16 %v401_v2 }
  0xad   : > { %1016 = vmatpush2.bf16.msra.mxu1 %v822_v6  ;;  %976 = vmatprep.subr.bf16.mxu0 %v687_v7  ;;  %v526_v6 = vld [vmem:[%s2530_s9 + $0x480] sm:$0xff]  ;;  %v400_v7 = vld [vmem:[%s2530_s9 + $0x90] sm:$0xff] }
  0xae   : > { %1017 = vmatprep.subr.bf16.mxu1 %v815_v8  ;;  %v870_v8 = vunpack.c.h.s8.bf16 %v526_v6  ;;  %v616_v9 = vunpack.c.h.s8.bf16 %v400_v7  ;;  %v608_v15 = vunpack.c.l.s8.bf16 %v400_v7 }
  0xb0   : > { %977 = vmatpush2.bf16.msra.mxu0 %v686_v11  ;;  %v609_v11 = vunpack.c.l.s8.bf16 %v401_v2 }
  0xb1   : > { %1018 = vmatpush2.bf16.msra.mxu1 %v814_v12  ;;  %978 = vmatprep.subr.bf16.mxu0 %v679_v13  ;;  %v519_v12 = vld [vmem:[%s2530_s9 + $0x448] sm:$0xff]  ;;  %v393_v13 = vld [vmem:[%s2530_s9 + $0x58] sm:$0xff] }
  0xb2   : > { %1019 = vmatprep.subr.bf16.mxu1 %v807_v14  ;;  %v862_v14 = vunpack.c.l.s8.bf16 %v526_v6  ;;  %v855_v16 = vunpack.c.h.s8.bf16 %v519_v12  ;;  %v847_v22 = vunpack.c.l.s8.bf16 %v519_v12 }
  0xb4   : > { %979 = vmatpush2.bf16.msra.mxu0 %v678_v17  ;;  %v601_v17 = vunpack.c.h.s8.bf16 %v393_v13 }
  0xb5   : > { %1020 = vmatpush2.bf16.msra.mxu1 %v806_v18  ;;  %980 = vmatprep.subr.bf16.mxu0 %v671_v19  ;;  %v518_v18 = vld [vmem:[%s2530_s9 + $0x440] sm:$0xff]  ;;  %v392_v19 = vld [vmem:[%s2530_s9 + $0x50] sm:$0xff] }
  0xb6   : > { %1021 = vmatprep.subr.bf16.mxu1 %v799_v20  ;;  %v854_v20 = vunpack.c.h.s8.bf16 %v518_v18  ;;  %v600_v21 = vunpack.c.h.s8.bf16 %v392_v19  ;;  %v592_v27 = vunpack.c.l.s8.bf16 %v392_v19 }
  0xb8   : > { %981 = vmatpush2.bf16.msra.mxu0 %v670_v23  ;;  %v593_v23 = vunpack.c.l.s8.bf16 %v393_v13 }
  0xb9   : > { %1022 = vmatpush2.bf16.msra.mxu1 %v798_v24  ;;  %982 = vmatprep.subr.bf16.mxu0 %v663_v25  ;;  %v511_v24 = vld [vmem:[%s2530_s9 + $0x408] sm:$0xff]  ;;  %v385_v25 = vld [vmem:[%s2530_s9 + $0x18] sm:$0xff] }
  0xba   : > { %1023 = vmatprep.subr.bf16.mxu1 %v791_v26  ;;  %v846_v26 = vunpack.c.l.s8.bf16 %v518_v18  ;;  %v839_v28 = vunpack.c.h.s8.bf16 %v511_v24  ;;  %v831_v34 = vunpack.c.l.s8.bf16 %v511_v24 }
  0xbc   : > { %983 = vmatpush2.bf16.msra.mxu0 %v662_v29  ;;  %v585_v29 = vunpack.c.h.s8.bf16 %v385_v25 }
  0xbd   : > { %1024 = vmatpush2.bf16.msra.mxu1 %v790_v30  ;;  %984 = vmatprep.subr.bf16.mxu0 %v655_v31  ;;  %v510_v30 = vld [vmem:[%s2530_s9 + $0x400] sm:$0xff]  ;;  %v384_v31 = vld [vmem:[%s2530_s9 + $0x10] sm:$0xff] }
  0xbe   : > { %1025 = vmatprep.subr.bf16.mxu1 %v783_v32  ;;  %v838_v32 = vunpack.c.h.s8.bf16 %v510_v30  ;;  %v584_v33 = vunpack.c.h.s8.bf16 %v384_v31  ;;  %v576_v39 = vunpack.c.l.s8.bf16 %v384_v31 }
  0xc0   : > { %985 = vmatpush2.bf16.msra.mxu0 %v654_v35  ;;  %v577_v35 = vunpack.c.l.s8.bf16 %v385_v25 }
  0xc1   : > { %1026 = vmatpush2.bf16.msra.mxu1 %v782_v36  ;;  %986 = vmatprep.subr.bf16.mxu0 %v647_v37  ;;  %v567_v36 = vld [vmem:[%s2530_s9 + $0x5c8] sm:$0xff]  ;;  %v441_v37 = vld [vmem:[%s2530_s9 + $0x1d8] sm:$0xff] }
  0xc2   : > { %1027 = vmatprep.subr.bf16.mxu1 %v775_v38  ;;  %v830_v38 = vunpack.c.l.s8.bf16 %v510_v30  ;;  %v951_v40 = vunpack.c.h.s8.bf16 %v567_v36  ;;  %v943_v46 = vunpack.c.l.s8.bf16 %v567_v36 }
  0xc4   : > { %987 = vmatpush2.bf16.msra.mxu0 %v646_v41  ;;  %v697_v41 = vunpack.c.h.s8.bf16 %v441_v37 }
  0xc5   : > { %1028 = vmatpush2.bf16.msra.mxu1 %v774_v42  ;;  %988 = vmatprep.subr.bf16.mxu0 %v639_v43  ;;  %v566_v42 = vld [vmem:[%s2530_s9 + $0x5c0] sm:$0xff]  ;;  %v440_v43 = vld [vmem:[%s2530_s9 + $0x1d0] sm:$0xff] }
  0xc6   : > { %1029 = vmatprep.subr.bf16.mxu1 %v767_v44  ;;  %v950_v44 = vunpack.c.h.s8.bf16 %v566_v42  ;;  %v696_v45 = vunpack.c.h.s8.bf16 %v440_v43  ;;  %v688_v54 = vunpack.c.l.s8.bf16 %v440_v43 }
  0xc8   : > { %989 = vmatpush2.bf16.msra.mxu0 %v638_v48  ;;  %v689_v48 = vunpack.c.l.s8.bf16 %v441_v37 }
  0xc9   : > { %1030 = vmatpush2.bf16.msra.mxu1 %v766_v49  ;;  %1040 = vmatprep.subr.bf16.mxu0 %v887_v50  ;;  %v559_v49 = vld [vmem:[%s2530_s9 + $0x588] sm:$0xff]  ;;  %v433_v50 = vld [vmem:[%s2530_s9 + $0x198] sm:$0xff] }
  0xca   : > { %1081 = vmatprep.subr.bf16.mxu1 %v633_v53  ;;  %v942_v53 = vunpack.c.l.s8.bf16 %v566_v42  ;;  %v935_v55 = vunpack.c.h.s8.bf16 %v559_v49  ;;  %v681_v56 = vunpack.c.h.s8.bf16 %v433_v50  ;;  %v927_v1 = vunpack.c.l.s8.bf16 %v559_v49 }
  0xcb   : > { %991 = vmatmul.mubr.bf16.vlgmr.msra.gmra.mxu0 %v2600_v57  ;;  %v673_v2 = vunpack.c.l.s8.bf16 %v433_v50 }
  0xcc   : > { %1032 = vmatmul.mubr.bf16.vlgmr.msra.gmra.mxu1 %v2604_v58  ;;  %1041 = vmatpush1.bf16.msra.mxu0 %v886_v59  ;;  %v558_v59 = vld [vmem:[%s2530_s9 + $0x580] sm:$0xff] }
  0xcd   : > { %1082 = vmatpush1.bf16.msra.mxu1 %v632_v60  ;;  %1042 = vmatprep.subr.bf16.mxu0 %v879_v63  ;;  %v432_v60 = vld [vmem:[%s2530_s9 + $0x190] sm:$0xff]  ;;  %v934_v63 = vunpack.c.h.s8.bf16 %v558_v59 }
  0xce   : > { %1083 = vmatprep.subr.bf16.mxu1 %v625_v0  ;;  %1072 = vmatprep.mubr.bf16.mxu0 %v2608_v3  ;;  %v680_v0 = vunpack.c.h.s8.bf16 %v432_v60 }
  0xcf   : > { %1113 = vmatprep.mubr.bf16.mxu1 %v2570_v61 }
  0xd0   : > { %1043 = vmatpush1.bf16.msra.mxu0 %v878_v51  ;;  %v551_v51 = vld [vmem:[%s2530_s9 + $0x548] sm:$0xff] }
  0xd1   : > { %1084 = vmatpush1.bf16.msra.mxu1 %v624_v52  ;;  %1044 = vmatprep.subr.bf16.mxu0 %v871_v4  ;;  %v425_v52 = vld [vmem:[%s2530_s9 + $0x158] sm:$0xff]  ;;  %v926_v4 = vunpack.c.l.s8.bf16 %v558_v59  ;;  %v919_v6 = vunpack.c.h.s8.bf16 %v551_v51  ;;  %v911_v12 = vunpack.c.l.s8.bf16 %v551_v51 }
  0xd2   : > { %1085 = vmatprep.subr.bf16.mxu1 %v617_v5  ;;  %v672_v5 = vunpack.c.l.s8.bf16 %v432_v60  ;;  %v665_v7 = vunpack.c.h.s8.bf16 %v425_v52  ;;  %v657_v13 = vunpack.c.l.s8.bf16 %v425_v52 }
  0xd4   : > { %1045 = vmatpush1.bf16.msra.mxu0 %v870_v8  ;;  %v550_v8 = vld [vmem:[%s2530_s9 + $0x540] sm:$0xff] }
  0xd5   : > { %1086 = vmatpush1.bf16.msra.mxu1 %v616_v9  ;;  %1046 = vmatprep.subr.bf16.mxu0 %v863_v10  ;;  %v424_v9 = vld [vmem:[%s2530_s9 + $0x150] sm:$0xff]  ;;  %v918_v10 = vunpack.c.h.s8.bf16 %v550_v8 }
  0xd6   : > { %1087 = vmatprep.subr.bf16.mxu1 %v609_v11  ;;  %v664_v11 = vunpack.c.h.s8.bf16 %v424_v9 }
  0xd8   : > { %1047 = vmatpush1.bf16.msra.mxu0 %v862_v14  ;;  %v543_v14 = vld [vmem:[%s2530_s9 + $0x508] sm:$0xff] }
  0xd9   : > { %1088 = vmatpush1.bf16.msra.mxu1 %v608_v15  ;;  %1048 = vmatprep.subr.bf16.mxu0 %v855_v16  ;;  %v417_v15 = vld [vmem:[%s2530_s9 + $0x118] sm:$0xff]  ;;  %v910_v16 = vunpack.c.l.s8.bf16 %v550_v8  ;;  %v903_v18 = vunpack.c.h.s8.bf16 %v543_v14  ;;  %v895_v24 = vunpack.c.l.s8.bf16 %v543_v14 }
  0xda   : > { %1089 = vmatprep.subr.bf16.mxu1 %v601_v17  ;;  %v656_v17 = vunpack.c.l.s8.bf16 %v424_v9  ;;  %v649_v19 = vunpack.c.h.s8.bf16 %v417_v15  ;;  %v641_v25 = vunpack.c.l.s8.bf16 %v417_v15 }
  0xdc   : > { %1049 = vmatpush1.bf16.msra.mxu0 %v854_v20  ;;  %v542_v20 = vld [vmem:[%s2530_s9 + $0x500] sm:$0xff] }
  0xdd   : > { %1090 = vmatpush1.bf16.msra.mxu1 %v600_v21  ;;  %1050 = vmatprep.subr.bf16.mxu0 %v847_v22  ;;  %v416_v21 = vld [vmem:[%s2530_s9 + $0x110] sm:$0xff]  ;;  %v902_v22 = vunpack.c.h.s8.bf16 %v542_v20 }
  0xde   : > { %1091 = vmatprep.subr.bf16.mxu1 %v593_v23  ;;  %v648_v23 = vunpack.c.h.s8.bf16 %v416_v21 }
  0xe0   : > { %1051 = vmatpush1.bf16.msra.mxu0 %v846_v26  ;;  %v473_v26 = vld [vmem:[%s2530_s9 + $0x2d8] sm:$0xff] }
  0xe1   : > { %1092 = vmatpush1.bf16.msra.mxu1 %v592_v27  ;;  %1052 = vmatprep.subr.bf16.mxu0 %v839_v28  ;;  %v537_v27 = vld [vmem:[%s2530_s9 + $0x4d8] sm:$0xff]  ;;  %v894_v28 = vunpack.c.l.s8.bf16 %v542_v20  ;;  %v761_v30 = vunpack.c.h.s8.bf16 %v473_v26  ;;  %v753_v37 = vunpack.c.l.s8.bf16 %v473_v26 }
  0xe2   : > { %1093 = vmatprep.subr.bf16.mxu1 %v585_v29  ;;  %v640_v29 = vunpack.c.l.s8.bf16 %v416_v21  ;;  %v889_v31 = vunpack.c.h.s8.bf16 %v537_v27 }
  0xe4   : > { %1053 = vmatpush1.bf16.msra.mxu0 %v838_v32  ;;  %v472_v32 = vld [vmem:[%s2530_s9 + $0x2d0] sm:$0xff] }
  0xe5   : > { %1094 = vmatpush1.bf16.msra.mxu1 %v584_v33  ;;  %1054 = vmatprep.subr.bf16.mxu0 %v831_v34  ;;  %v536_v33 = vld [vmem:[%s2530_s9 + $0x4d0] sm:$0xff]  ;;  %v2646_v34 = vpack.c.bf16 %v2592_v47, %v2592_v47  ;;  %v752_v47 = vunpack.c.l.s8.bf16 %v472_v32 }
  0xe6   : > { %1095 = vmatprep.subr.bf16.mxu1 %v577_v35  ;;  %v760_v35 = vunpack.c.h.s8.bf16 %v472_v32  ;;  %v888_v36 = vunpack.c.h.s8.bf16 %v536_v33 }
  0xe8   : > { %1055 = vmatpush1.bf16.msra.mxu0 %v830_v38  ;;  %v881_v38 = vunpack.c.l.s8.bf16 %v537_v27 }
  0xe9   : > { %1096 = vmatpush1.bf16.msra.mxu1 %v576_v39  ;;  %1056 = vmatprep.subr.bf16.mxu0 %v951_v40  ;;  %v465_v39 = vld [vmem:[%s2530_s9 + $0x298] sm:$0xff] }
  0xea   : > { %1097 = vmatprep.subr.bf16.mxu1 %v697_v41  ;;  %v529_v40 = vld [vmem:[%s2530_s9 + $0x498] sm:$0xff]  ;;  %v880_v41 = vunpack.c.l.s8.bf16 %v536_v33  ;;  %v745_v42 = vunpack.c.h.s8.bf16 %v465_v39  ;;  %v737_v49 = vunpack.c.l.s8.bf16 %v465_v39 }
  0xeb   : > { %v873_v43 = vunpack.c.h.s8.bf16 %v529_v40  ;;  %v865_v50 = vunpack.c.l.s8.bf16 %v529_v40 }
  0xec   : > { %1057 = vmatpush2.bf16.msra.mxu0 %v950_v44  ;;  %v464_v44 = vld [vmem:[%s2530_s9 + $0x290] sm:$0xff] }
  0xed   : > { %1098 = vmatpush2.bf16.msra.mxu1 %v696_v45  ;;  %1058 = vmatprep.subr.bf16.mxu0 %v943_v46  ;;  %v528_v45 = vld [vmem:[%s2530_s9 + $0x490] sm:$0xff]  ;;  %v744_v46 = vunpack.c.h.s8.bf16 %v464_v44 }
  0xee   : > { %1099 = vmatprep.subr.bf16.mxu1 %v689_v48  ;;  %v872_v48 = vunpack.c.h.s8.bf16 %v528_v45 }
  0xf0   : > { %1059 = vmatpush2.bf16.msra.mxu0 %v942_v53  ;;  %v457_v53 = vld [vmem:[%s2530_s9 + $0x258] sm:$0xff] }
  0xf1   : > { %1100 = vmatpush2.bf16.msra.mxu1 %v688_v54  ;;  %1060 = vmatprep.subr.bf16.mxu0 %v935_v55  ;;  %v521_v54 = vld [vmem:[%s2530_s9 + $0x458] sm:$0xff]  ;;  %v736_v55 = vunpack.c.l.s8.bf16 %v464_v44  ;;  %v729_v59 = vunpack.c.h.s8.bf16 %v457_v53  ;;  %v721_v51 = vunpack.c.l.s8.bf16 %v457_v53 }
  0xf2   : > { %1101 = vmatprep.subr.bf16.mxu1 %v681_v56  ;;  %v864_v56 = vunpack.c.l.s8.bf16 %v528_v45  ;;  %v857_v60 = vunpack.c.h.s8.bf16 %v521_v54  ;;  %v849_v52 = vunpack.c.l.s8.bf16 %v521_v54 }
  0xf4   : > { %1061 = vmatpush2.bf16.msra.mxu0 %v934_v63  ;;  %v456_v63 = vld [vmem:[%s2530_s9 + $0x250] sm:$0xff] }
  0xf5   : > { %1102 = vmatpush2.bf16.msra.mxu1 %v680_v0  ;;  %1062 = vmatprep.subr.bf16.mxu0 %v927_v1  ;;  %v520_v0 = vld [vmem:[%s2530_s9 + $0x450] sm:$0xff]  ;;  %v728_v1 = vunpack.c.h.s8.bf16 %v456_v63 }
  0xf6   : > { %1103 = vmatprep.subr.bf16.mxu1 %v673_v2  ;;  %v856_v2 = vunpack.c.h.s8.bf16 %v520_v0 }
  0xf8   : > { %1063 = vmatpush2.bf16.msra.mxu0 %v926_v4  ;;  %v449_v4 = vld [vmem:[%s2530_s9 + $0x218] sm:$0xff] }
  0xf9   : > { %1104 = vmatpush2.bf16.msra.mxu1 %v672_v5  ;;  %1064 = vmatprep.subr.bf16.mxu0 %v919_v6  ;;  %v513_v5 = vld [vmem:[%s2530_s9 + $0x418] sm:$0xff]  ;;  %v720_v6 = vunpack.c.l.s8.bf16 %v456_v63  ;;  %v713_v8 = vunpack.c.h.s8.bf16 %v449_v4  ;;  %v705_v14 = vunpack.c.l.s8.bf16 %v449_v4 }
  0xfa   : > { %1105 = vmatprep.subr.bf16.mxu1 %v665_v7  ;;  %v848_v7 = vunpack.c.l.s8.bf16 %v520_v0  ;;  %v841_v9 = vunpack.c.h.s8.bf16 %v513_v5  ;;  %v833_v15 = vunpack.c.l.s8.bf16 %v513_v5 }
  0xfc   : > { %1065 = vmatpush2.bf16.msra.mxu0 %v918_v10  ;;  %v448_v10 = vld [vmem:[%s2530_s9 + $0x210] sm:$0xff] }
  0xfd   : > { %1106 = vmatpush2.bf16.msra.mxu1 %v664_v11  ;;  %1066 = vmatprep.subr.bf16.mxu0 %v911_v12  ;;  %v512_v11 = vld [vmem:[%s2530_s9 + $0x410] sm:$0xff]  ;;  %v712_v12 = vunpack.c.h.s8.bf16 %v448_v10 }
  0xfe   : > { %1107 = vmatprep.subr.bf16.mxu1 %v657_v13  ;;  %v840_v13 = vunpack.c.h.s8.bf16 %v512_v11 }
 0x100   : > { %1067 = vmatpush2.bf16.msra.mxu0 %v910_v16  ;;  %v505_v16 = vld [vmem:[%s2530_s9 + $0x3d8] sm:$0xff] }
 0x101   : > { %1108 = vmatpush2.bf16.msra.mxu1 %v656_v17  ;;  %1068 = vmatprep.subr.bf16.mxu0 %v903_v18  ;;  %v569_v17 = vld [vmem:[%s2530_s9 + $0x5d8] sm:$0xff]  ;;  %v704_v18 = vunpack.c.l.s8.bf16 %v448_v10  ;;  %v825_v20 = vunpack.c.h.s8.bf16 %v505_v16  ;;  %v817_v26 = vunpack.c.l.s8.bf16 %v505_v16 }
 0x102   : > { %1109 = vmatprep.subr.bf16.mxu1 %v649_v19  ;;  %v832_v19 = vunpack.c.l.s8.bf16 %v512_v11  ;;  %v953_v21 = vunpack.c.h.s8.bf16 %v569_v17  ;;  %v945_v27 = vunpack.c.l.s8.bf16 %v569_v17 }
 0x104   : > { %1069 = vmatpush2.bf16.msra.mxu0 %v902_v22  ;;  %v504_v22 = vld [vmem:[%s2530_s9 + $0x3d0] sm:$0xff] }
 0x105   : > { %1110 = vmatpush2.bf16.msra.mxu1 %v648_v23  ;;  %1070 = vmatprep.subr.bf16.mxu0 %v895_v24  ;;  %v568_v23 = vld [vmem:[%s2530_s9 + $0x5d0] sm:$0xff]  ;;  %v824_v24 = vunpack.c.h.s8.bf16 %v504_v22 }
 0x106   : > { %1111 = vmatprep.subr.bf16.mxu1 %v641_v25  ;;  %v952_v25 = vunpack.c.h.s8.bf16 %v568_v23 }
 0x108   : > { %1071 = vmatpush2.bf16.msra.mxu0 %v894_v28  ;;  %v497_v28 = vld [vmem:[%s2530_s9 + $0x398] sm:$0xff] }
 0x109   : > { %1112 = vmatpush2.bf16.msra.mxu1 %v640_v29  ;;  %1122 = vmatprep.subr.bf16.mxu0 %v761_v30  ;;  %v561_v29 = vld [vmem:[%s2530_s9 + $0x598] sm:$0xff]  ;;  %v816_v30 = vunpack.c.l.s8.bf16 %v504_v22  ;;  %v809_v32 = vunpack.c.h.s8.bf16 %v497_v28  ;;  %v801_v39 = vunpack.c.l.s8.bf16 %v497_v28 }
 0x10a   : > { %1163 = vmatprep.subr.bf16.mxu1 %v889_v31  ;;  %v944_v31 = vunpack.c.l.s8.bf16 %v568_v23  ;;  %v937_v33 = vunpack.c.h.s8.bf16 %v561_v29  ;;  %v929_v40 = vunpack.c.l.s8.bf16 %v561_v29 }
 0x10b   : > { %1073 = vmatmul.mubr.bf16.vlgmr.msra.gmra.mxu0 %v2646_v34 }
 0x10c   : > { %1114 = vmatmul.mubr.bf16.vlgmr.msra.gmra.mxu1 %v2600_v57  ;;  %1123 = vmatpush1.bf16.msra.mxu0 %v760_v35  ;;  %v496_v35 = vld [vmem:[%s2530_s9 + $0x390] sm:$0xff] }
 0x10d   : > { %1164 = vmatpush1.bf16.msra.mxu1 %v888_v36  ;;  %1124 = vmatprep.subr.bf16.mxu0 %v753_v37  ;;  %v560_v36 = vld [vmem:[%s2530_s9 + $0x590] sm:$0xff]  ;;  %v808_v37 = vunpack.c.h.s8.bf16 %v496_v35 }
 0x10e   : > { %1165 = vmatprep.subr.bf16.mxu1 %v881_v38  ;;  %1154 = vmatprep.mubr.bf16.mxu0 %v2572_v62  ;;  %v936_v38 = vunpack.c.h.s8.bf16 %v560_v36 }
 0x10f   : > { %1195 = vmatprep.mubr.bf16.mxu1 %v2608_v3 }
 0x110   : > { %1125 = vmatpush1.bf16.msra.mxu0 %v752_v47  ;;  %v489_v47 = vld [vmem:[%s2530_s9 + $0x358] sm:$0xff] }
 0x111   : > { %1166 = vmatpush1.bf16.msra.mxu1 %v880_v41  ;;  %1126 = vmatprep.subr.bf16.mxu0 %v745_v42  ;;  %v553_v41 = vld [vmem:[%s2530_s9 + $0x558] sm:$0xff]  ;;  %v800_v42 = vunpack.c.l.s8.bf16 %v496_v35  ;;  %v793_v44 = vunpack.c.h.s8.bf16 %v489_v47  ;;  %v785_v53 = vunpack.c.l.s8.bf16 %v489_v47 }
 0x112   : > { %1167 = vmatprep.subr.bf16.mxu1 %v873_v43  ;;  %v928_v43 = vunpack.c.l.s8.bf16 %v560_v36  ;;  %v921_v45 = vunpack.c.h.s8.bf16 %v553_v41  ;;  %v913_v54 = vunpack.c.l.s8.bf16 %v553_v41 }
 0x114   : > { %1127 = vmatpush1.bf16.msra.mxu0 %v744_v46  ;;  %v488_v46 = vld [vmem:[%s2530_s9 + $0x350] sm:$0xff] }
 0x115   : > { %1168 = vmatpush1.bf16.msra.mxu1 %v872_v48  ;;  %1128 = vmatprep.subr.bf16.mxu0 %v737_v49  ;;  %v552_v48 = vld [vmem:[%s2530_s9 + $0x550] sm:$0xff]  ;;  %v792_v49 = vunpack.c.h.s8.bf16 %v488_v46 }
 0x116   : > { %1169 = vmatprep.subr.bf16.mxu1 %v865_v50  ;;  %v920_v50 = vunpack.c.h.s8.bf16 %v552_v48 }
 0x118   : > { %1129 = vmatpush1.bf16.msra.mxu0 %v736_v55  ;;  %v481_v55 = vld [vmem:[%s2530_s9 + $0x318] sm:$0xff] }
 0x119   : > { %1170 = vmatpush1.bf16.msra.mxu1 %v864_v56  ;;  %1130 = vmatprep.subr.bf16.mxu0 %v729_v59  ;;  %v545_v56 = vld [vmem:[%s2530_s9 + $0x518] sm:$0xff]  ;;  %v784_v59 = vunpack.c.l.s8.bf16 %v488_v46  ;;  %v777_v63 = vunpack.c.h.s8.bf16 %v481_v55  ;;  %v769_v4 = vunpack.c.l.s8.bf16 %v481_v55 }
 0x11a   : > { %1171 = vmatprep.subr.bf16.mxu1 %v857_v60  ;;  %v912_v60 = vunpack.c.l.s8.bf16 %v552_v48  ;;  %v905_v0 = vunpack.c.h.s8.bf16 %v545_v56  ;;  %v897_v5 = vunpack.c.l.s8.bf16 %v545_v56 }
 0x11c   : > { %1131 = vmatpush1.bf16.msra.mxu0 %v728_v1  ;;  %v480_v1 = vld [vmem:[%s2530_s9 + $0x310] sm:$0xff] }
 0x11d   : > { %1172 = vmatpush1.bf16.msra.mxu1 %v856_v2  ;;  %1132 = vmatprep.subr.bf16.mxu0 %v721_v51  ;;  %v544_v2 = vld [vmem:[%s2530_s9 + $0x510] sm:$0xff]  ;;  %v776_v51 = vunpack.c.h.s8.bf16 %v480_v1 }
 0x11e   : > { %1173 = vmatprep.subr.bf16.mxu1 %v849_v52  ;;  %v904_v52 = vunpack.c.h.s8.bf16 %v544_v2 }
 0x120   : > { %1133 = vmatpush1.bf16.msra.mxu0 %v720_v6  ;;  %v411_v6 = vld [vmem:[%s2530_s9 + $0xe8] sm:$0xff] }
 0x121   : > { %1174 = vmatpush1.bf16.msra.mxu1 %v848_v7  ;;  %1134 = vmatprep.subr.bf16.mxu0 %v713_v8  ;;  %v475_v7 = vld [vmem:[%s2530_s9 + $0x2e8] sm:$0xff]  ;;  %v768_v8 = vunpack.c.l.s8.bf16 %v480_v1  ;;  %v635_v10 = vunpack.c.h.s8.bf16 %v411_v6  ;;  %v627_v16 = vunpack.c.l.s8.bf16 %v411_v6 }
 0x122   : > { %1175 = vmatprep.subr.bf16.mxu1 %v841_v9  ;;  %v896_v9 = vunpack.c.l.s8.bf16 %v544_v2  ;;  %v763_v11 = vunpack.c.h.s8.bf16 %v475_v7  ;;  %v755_v17 = vunpack.c.l.s8.bf16 %v475_v7 }
 0x124   : > { %1135 = vmatpush1.bf16.msra.mxu0 %v712_v12  ;;  %v410_v12 = vld [vmem:[%s2530_s9 + $0xe0] sm:$0xff] }
 0x125   : > { %1176 = vmatpush1.bf16.msra.mxu1 %v840_v13  ;;  %1136 = vmatprep.subr.bf16.mxu0 %v705_v14  ;;  %v474_v13 = vld [vmem:[%s2530_s9 + $0x2e0] sm:$0xff]  ;;  %v634_v14 = vunpack.c.h.s8.bf16 %v410_v12 }
 0x126   : > { %1177 = vmatprep.subr.bf16.mxu1 %v833_v15  ;;  %v762_v15 = vunpack.c.h.s8.bf16 %v474_v13 }
 0x128   : > { %1137 = vmatpush1.bf16.msra.mxu0 %v704_v18  ;;  %v403_v18 = vld [vmem:[%s2530_s9 + $0xa8] sm:$0xff] }
 0x129   : > { %1178 = vmatpush1.bf16.msra.mxu1 %v832_v19  ;;  %1138 = vmatprep.subr.bf16.mxu0 %v825_v20  ;;  %v467_v19 = vld [vmem:[%s2530_s9 + $0x2a8] sm:$0xff]  ;;  %v626_v20 = vunpack.c.l.s8.bf16 %v410_v12  ;;  %v619_v22 = vunpack.c.h.s8.bf16 %v403_v18  ;;  %v611_v28 = vunpack.c.l.s8.bf16 %v403_v18 }
 0x12a   : > { %1179 = vmatprep.subr.bf16.mxu1 %v953_v21  ;;  %v754_v21 = vunpack.c.l.s8.bf16 %v474_v13  ;;  %v747_v23 = vunpack.c.h.s8.bf16 %v467_v19  ;;  %v739_v29 = vunpack.c.l.s8.bf16 %v467_v19 }
 0x12c   : > { %1139 = vmatpush2.bf16.msra.mxu0 %v824_v24  ;;  %v402_v24 = vld [vmem:[%s2530_s9 + $0xa0] sm:$0xff] }
 0x12d   : > { %1180 = vmatpush2.bf16.msra.mxu1 %v952_v25  ;;  %1140 = vmatprep.subr.bf16.mxu0 %v817_v26  ;;  %v466_v25 = vld [vmem:[%s2530_s9 + $0x2a0] sm:$0xff]  ;;  %v618_v26 = vunpack.c.h.s8.bf16 %v402_v24 }
 0x12e   : > { %1181 = vmatprep.subr.bf16.mxu1 %v945_v27  ;;  %v746_v27 = vunpack.c.h.s8.bf16 %v466_v25 }
 0x130   : > { %1141 = vmatpush2.bf16.msra.mxu0 %v816_v30  ;;  %v395_v30 = vld [vmem:[%s2530_s9 + $0x68] sm:$0xff] }
 0x131   : > { %1182 = vmatpush2.bf16.msra.mxu1 %v944_v31  ;;  %1142 = vmatprep.subr.bf16.mxu0 %v809_v32  ;;  %v459_v31 = vld [vmem:[%s2530_s9 + $0x268] sm:$0xff]  ;;  %v610_v32 = vunpack.c.l.s8.bf16 %v402_v24  ;;  %v603_v35 = vunpack.c.h.s8.bf16 %v395_v30  ;;  %v595_v47 = vunpack.c.l.s8.bf16 %v395_v30 }
 0x132   : > { %1183 = vmatprep.subr.bf16.mxu1 %v937_v33  ;;  %v738_v33 = vunpack.c.l.s8.bf16 %v466_v25  ;;  %v731_v36 = vunpack.c.h.s8.bf16 %v459_v31  ;;  %v723_v41 = vunpack.c.l.s8.bf16 %v459_v31 }
 0x134   : > { %1143 = vmatpush2.bf16.msra.mxu0 %v808_v37  ;;  %v394_v37 = vld [vmem:[%s2530_s9 + $0x60] sm:$0xff] }
 0x135   : > { %1184 = vmatpush2.bf16.msra.mxu1 %v936_v38  ;;  %1144 = vmatprep.subr.bf16.mxu0 %v801_v39  ;;  %v458_v38 = vld [vmem:[%s2530_s9 + $0x260] sm:$0xff]  ;;  %v602_v39 = vunpack.c.h.s8.bf16 %v394_v37 }
 0x136   : > { %1185 = vmatprep.subr.bf16.mxu1 %v929_v40  ;;  %v730_v40 = vunpack.c.h.s8.bf16 %v458_v38 }
 0x138   : > { %1145 = vmatpush2.bf16.msra.mxu0 %v800_v42  ;;  %v387_v42 = vld [vmem:[%s2530_s9 + $0x28] sm:$0xff] }
 0x139   : > { %1186 = vmatpush2.bf16.msra.mxu1 %v928_v43  ;;  %1146 = vmatprep.subr.bf16.mxu0 %v793_v44  ;;  %v451_v43 = vld [vmem:[%s2530_s9 + $0x228] sm:$0xff]  ;;  %v594_v44 = vunpack.c.l.s8.bf16 %v394_v37  ;;  %v587_v46 = vunpack.c.h.s8.bf16 %v387_v42  ;;  %v579_v55 = vunpack.c.l.s8.bf16 %v387_v42 }
 0x13a   : > { %1187 = vmatprep.subr.bf16.mxu1 %v921_v45  ;;  %v722_v45 = vunpack.c.l.s8.bf16 %v458_v38  ;;  %v715_v48 = vunpack.c.h.s8.bf16 %v451_v43  ;;  %v707_v56 = vunpack.c.l.s8.bf16 %v451_v43 }
 0x13c   : > { %1147 = vmatpush2.bf16.msra.mxu0 %v792_v49  ;;  %v386_v49 = vld [vmem:[%s2530_s9 + $0x20] sm:$0xff] }
 0x13d   : > { %1188 = vmatpush2.bf16.msra.mxu1 %v920_v50  ;;  %1148 = vmatprep.subr.bf16.mxu0 %v785_v53  ;;  %v450_v50 = vld [vmem:[%s2530_s9 + $0x220] sm:$0xff]  ;;  %v586_v53 = vunpack.c.h.s8.bf16 %v386_v49 }
 0x13e   : > { %1189 = vmatprep.subr.bf16.mxu1 %v913_v54  ;;  %v714_v54 = vunpack.c.h.s8.bf16 %v450_v50 }
 0x140   : > { %1149 = vmatpush2.bf16.msra.mxu0 %v784_v59  ;;  %v443_v59 = vld [vmem:[%s2530_s9 + $0x1e8] sm:$0xff] }
 0x141   : > { %1190 = vmatpush2.bf16.msra.mxu1 %v912_v60  ;;  %1150 = vmatprep.subr.bf16.mxu0 %v777_v63  ;;  %v507_v60 = vld [vmem:[%s2530_s9 + $0x3e8] sm:$0xff]  ;;  %v578_v63 = vunpack.c.l.s8.bf16 %v386_v49  ;;  %v699_v1 = vunpack.c.h.s8.bf16 %v443_v59  ;;  %v691_v6 = vunpack.c.l.s8.bf16 %v443_v59 }
 0x142   : > { %1191 = vmatprep.subr.bf16.mxu1 %v905_v0  ;;  %v706_v0 = vunpack.c.l.s8.bf16 %v450_v50  ;;  %v827_v2 = vunpack.c.h.s8.bf16 %v507_v60  ;;  %v819_v7 = vunpack.c.l.s8.bf16 %v507_v60 }
 0x144   : > { %1151 = vmatpush2.bf16.msra.mxu0 %v776_v51  ;;  %v442_v51 = vld [vmem:[%s2530_s9 + $0x1e0] sm:$0xff] }
 0x145   : > { %1192 = vmatpush2.bf16.msra.mxu1 %v904_v52  ;;  %1152 = vmatprep.subr.bf16.mxu0 %v769_v4  ;;  %v506_v52 = vld [vmem:[%s2530_s9 + $0x3e0] sm:$0xff]  ;;  %v698_v4 = vunpack.c.h.s8.bf16 %v442_v51 }
 0x146   : > { %1193 = vmatprep.subr.bf16.mxu1 %v897_v5  ;;  %v826_v5 = vunpack.c.h.s8.bf16 %v506_v52 }
 0x148   : > { %1153 = vmatpush2.bf16.msra.mxu0 %v768_v8  ;;  %v435_v8 = vld [vmem:[%s2530_s9 + $0x1a8] sm:$0xff] }
 0x149   : > { %1194 = vmatpush2.bf16.msra.mxu1 %v896_v9  ;;  %1204 = vmatprep.subr.bf16.mxu0 %v635_v10  ;;  %v499_v9 = vld [vmem:[%s2530_s9 + $0x3a8] sm:$0xff]  ;;  %v690_v10 = vunpack.c.l.s8.bf16 %v442_v51  ;;  %v683_v12 = vunpack.c.h.s8.bf16 %v435_v8  ;;  %v675_v18 = vunpack.c.l.s8.bf16 %v435_v8 }
 0x14a   : > { %1245 = vmatprep.subr.bf16.mxu1 %v763_v11  ;;  %v818_v11 = vunpack.c.l.s8.bf16 %v506_v52  ;;  %v811_v13 = vunpack.c.h.s8.bf16 %v499_v9  ;;  %v803_v19 = vunpack.c.l.s8.bf16 %v499_v9  ;;  %v530_v9 = vld [vmem:[%s2530_s9 + $0x4a0] sm:$0xff] }
 0x14b   : > { %1155 = vmatmul.mubr.bf16.vlgmr.msra.gmra.mxu0 %v2604_v58 }
 0x14c   : > { %1196 = vmatmul.mubr.bf16.vlgmr.msra.gmra.mxu1 %v2646_v34  ;;  %1205 = vmatpush1.bf16.msra.mxu0 %v634_v14  ;;  %v434_v14 = vld [vmem:[%s2530_s9 + $0x1a0] sm:$0xff] }
 0x14d   : > { %1246 = vmatpush1.bf16.msra.mxu1 %v762_v15  ;;  %1206 = vmatprep.subr.bf16.mxu0 %v627_v16  ;;  %v498_v15 = vld [vmem:[%s2530_s9 + $0x3a0] sm:$0xff]  ;;  %v682_v16 = vunpack.c.h.s8.bf16 %v434_v14 }
 0x14e   : > { %1247 = vmatprep.subr.bf16.mxu1 %v755_v17  ;;  %1236 = vmatprep.mubr.bf16.mxu0 %v2570_v61  ;;  %v810_v17 = vunpack.c.h.s8.bf16 %v498_v15 }
 0x14f   : > { %1277 = vmatprep.mubr.bf16.mxu1 %v2572_v62 }
 0x150   : > { %1207 = vmatpush1.bf16.msra.mxu0 %v626_v20  ;;  %v427_v20 = vld [vmem:[%s2530_s9 + $0x168] sm:$0xff] }
 0x151   : > { %1248 = vmatpush1.bf16.msra.mxu1 %v754_v21  ;;  %1208 = vmatprep.subr.bf16.mxu0 %v619_v22  ;;  %v491_v21 = vld [vmem:[%s2530_s9 + $0x368] sm:$0xff]  ;;  %v674_v22 = vunpack.c.l.s8.bf16 %v434_v14  ;;  %v667_v24 = vunpack.c.h.s8.bf16 %v427_v20  ;;  %v659_v30 = vunpack.c.l.s8.bf16 %v427_v20  ;;  %v874_v14 = vunpack.c.h.s8.bf16 %v530_v9 }
 0x152   : > { %1249 = vmatprep.subr.bf16.mxu1 %v747_v23  ;;  %v802_v23 = vunpack.c.l.s8.bf16 %v498_v15  ;;  %v795_v25 = vunpack.c.h.s8.bf16 %v491_v21  ;;  %v787_v31 = vunpack.c.l.s8.bf16 %v491_v21  ;;  %v523_v20 = vld [vmem:[%s2530_s9 + $0x468] sm:$0xff]  ;;  %v397_v21 = vld [vmem:[%s2530_s9 + $0x78] sm:$0xff] }
 0x154   : > { %1209 = vmatpush1.bf16.msra.mxu0 %v618_v26  ;;  %v426_v26 = vld [vmem:[%s2530_s9 + $0x160] sm:$0xff] }
 0x155   : > { %1250 = vmatpush1.bf16.msra.mxu1 %v746_v27  ;;  %1210 = vmatprep.subr.bf16.mxu0 %v611_v28  ;;  %v490_v27 = vld [vmem:[%s2530_s9 + $0x360] sm:$0xff]  ;;  %v666_v28 = vunpack.c.h.s8.bf16 %v426_v26 }
 0x156   : > { %1251 = vmatprep.subr.bf16.mxu1 %v739_v29  ;;  %v794_v29 = vunpack.c.h.s8.bf16 %v490_v27 }
 0x158   : > { %1211 = vmatpush1.bf16.msra.mxu0 %v610_v32  ;;  %v419_v32 = vld [vmem:[%s2530_s9 + $0x128] sm:$0xff] }
 0x159   : > { %1252 = vmatpush1.bf16.msra.mxu1 %v738_v33  ;;  %1212 = vmatprep.subr.bf16.mxu0 %v603_v35  ;;  %v483_v33 = vld [vmem:[%s2530_s9 + $0x328] sm:$0xff]  ;;  %v658_v35 = vunpack.c.l.s8.bf16 %v426_v26  ;;  %v651_v37 = vunpack.c.h.s8.bf16 %v419_v32  ;;  %v643_v42 = vunpack.c.l.s8.bf16 %v419_v32  ;;  %v396_v26 = vld [vmem:[%s2530_s9 + $0x70] sm:$0xff]  ;;  %v389_v32 = vld [vmem:[%s2530_s9 + $0x38] sm:$0xff] }
 0x15a   : > { %1253 = vmatprep.subr.bf16.mxu1 %v731_v36  ;;  %v786_v36 = vunpack.c.l.s8.bf16 %v490_v27  ;;  %v779_v38 = vunpack.c.h.s8.bf16 %v483_v33  ;;  %v771_v43 = vunpack.c.l.s8.bf16 %v483_v33 }
 0x15c   : > { %1213 = vmatpush1.bf16.msra.mxu0 %v602_v39  ;;  %v418_v39 = vld [vmem:[%s2530_s9 + $0x120] sm:$0xff] }
 0x15d   : > { %1254 = vmatpush1.bf16.msra.mxu1 %v730_v40  ;;  %1214 = vmatprep.subr.bf16.mxu0 %v595_v47  ;;  %v482_v40 = vld [vmem:[%s2530_s9 + $0x320] sm:$0xff]  ;;  %v650_v47 = vunpack.c.h.s8.bf16 %v418_v39 }
 0x15e   : > { %1255 = vmatprep.subr.bf16.mxu1 %v723_v41  ;;  %v778_v41 = vunpack.c.h.s8.bf16 %v482_v40 }
 0x160   : > { %1215 = vmatpush1.bf16.msra.mxu0 %v594_v44  ;;  %v539_v44 = vld [vmem:[%s2530_s9 + $0x4e8] sm:$0xff] }
 0x161   : > { %1256 = vmatpush1.bf16.msra.mxu1 %v722_v45  ;;  %1216 = vmatprep.subr.bf16.mxu0 %v587_v46  ;;  %v413_v45 = vld [vmem:[%s2530_s9 + $0xf8] sm:$0xff]  ;;  %v642_v46 = vunpack.c.l.s8.bf16 %v418_v39  ;;  %v891_v49 = vunpack.c.h.s8.bf16 %v539_v44  ;;  %v883_v59 = vunpack.c.l.s8.bf16 %v539_v44  ;;  %v388_v39 = vld [vmem:[%s2530_s9 + $0x30] sm:$0xff] }
 0x162   : > { %1257 = vmatprep.subr.bf16.mxu1 %v715_v48  ;;  %v770_v48 = vunpack.c.l.s8.bf16 %v482_v40  ;;  %v637_v50 = vunpack.c.h.s8.bf16 %v413_v45  ;;  %v629_v60 = vunpack.c.l.s8.bf16 %v413_v45  ;;  %v445_v44 = vld [vmem:[%s2530_s9 + $0x1f8] sm:$0xff] }
 0x164   : > { %1217 = vmatpush1.bf16.msra.mxu0 %v586_v53  ;;  %v538_v53 = vld [vmem:[%s2530_s9 + $0x4e0] sm:$0xff] }
 0x165   : > { %1258 = vmatpush1.bf16.msra.mxu1 %v714_v54  ;;  %1218 = vmatprep.subr.bf16.mxu0 %v579_v55  ;;  %v412_v54 = vld [vmem:[%s2530_s9 + $0xf0] sm:$0xff]  ;;  %v890_v55 = vunpack.c.h.s8.bf16 %v538_v53  ;;  %v882_v52 = vunpack.c.l.s8.bf16 %v538_v53 }
 0x166   : > { %1259 = vmatprep.subr.bf16.mxu1 %v707_v56  ;;  %v636_v56 = vunpack.c.h.s8.bf16 %v412_v54  ;;  %v444_v53 = vld [vmem:[%s2530_s9 + $0x1f0] sm:$0xff] }
 0x168   : > { %1219 = vmatpush1.bf16.msra.mxu0 %v578_v63  ;;  %v531_v63 = vld [vmem:[%s2530_s9 + $0x4a8] sm:$0xff] }
 0x169   : > { %1260 = vmatpush1.bf16.msra.mxu1 %v706_v0  ;;  %1220 = vmatprep.subr.bf16.mxu0 %v699_v1  ;;  %v405_v0 = vld [vmem:[%s2530_s9 + $0xb8] sm:$0xff] }
 0x16a   : > { %1261 = vmatprep.subr.bf16.mxu1 %v827_v2  ;;  %v621_v8 = vunpack.c.h.s8.bf16 %v405_v0 }
 0x16c   : > { %1221 = vmatpush2.bf16.msra.mxu0 %v698_v4  ;;  %v628_v4 = vunpack.c.l.s8.bf16 %v412_v54 }
 0x16d   : > { %1262 = vmatpush2.bf16.msra.mxu1 %v826_v5  ;;  %1222 = vmatprep.subr.bf16.mxu0 %v691_v6 }
 0x16e   : > { %1263 = vmatprep.subr.bf16.mxu1 %v819_v7  ;;  %v875_v7 = vunpack.c.h.s8.bf16 %v531_v63 }
 0x170   : > { %1223 = vmatpush2.bf16.msra.mxu0 %v690_v10  ;;  %v404_v10 = vld [vmem:[%s2530_s9 + $0xb0] sm:$0xff] }
 0x171   : > { %1264 = vmatpush2.bf16.msra.mxu1 %v818_v11  ;;  %1224 = vmatprep.subr.bf16.mxu0 %v683_v12  ;;  %v620_v15 = vunpack.c.h.s8.bf16 %v404_v10 }
 0x172   : > { %1265 = vmatprep.subr.bf16.mxu1 %v811_v13 }
 0x174   : > { %1225 = vmatpush2.bf16.msra.mxu0 %v682_v16 }
 0x175   : > { %1266 = vmatpush2.bf16.msra.mxu1 %v810_v17  ;;  %1226 = vmatprep.subr.bf16.mxu0 %v675_v18  ;;  %v867_v18 = vunpack.c.l.s8.bf16 %v531_v63  ;;  %v437_v63 = vld [vmem:[%s2530_s9 + $0x1b8] sm:$0xff] }
 0x176   : > { %1267 = vmatprep.subr.bf16.mxu1 %v803_v19  ;;  %v613_v19 = vunpack.c.l.s8.bf16 %v405_v0 }
 0x178   : > { %1227 = vmatpush2.bf16.msra.mxu0 %v674_v22  ;;  %v866_v22 = vunpack.c.l.s8.bf16 %v530_v9  ;;  %v677_v9 = vunpack.c.l.s8.bf16 %v437_v63 }
 0x179   : > { %1268 = vmatpush2.bf16.msra.mxu1 %v802_v23  ;;  %1228 = vmatprep.subr.bf16.mxu0 %v667_v24  ;;  %v859_v23 = vunpack.c.h.s8.bf16 %v523_v20  ;;  %v605_v24 = vunpack.c.h.s8.bf16 %v397_v21 }
 0x17a   : > { %1269 = vmatprep.subr.bf16.mxu1 %v795_v25  ;;  %v522_v25 = vld [vmem:[%s2530_s9 + $0x460] sm:$0xff] }
 0x17b   : > { %v858_v27 = vunpack.c.h.s8.bf16 %v522_v25  ;;  %v850_v33 = vunpack.c.l.s8.bf16 %v522_v25 }
 0x17c   : > { %1229 = vmatpush2.bf16.msra.mxu0 %v666_v28  ;;  %v604_v28 = vunpack.c.h.s8.bf16 %v396_v26 }
 0x17d   : > { %1270 = vmatpush2.bf16.msra.mxu1 %v794_v29  ;;  %1230 = vmatprep.subr.bf16.mxu0 %v659_v30  ;;  %v851_v29 = vunpack.c.l.s8.bf16 %v523_v20  ;;  %v597_v30 = vunpack.c.l.s8.bf16 %v397_v21 }
 0x17e   : > { %1271 = vmatprep.subr.bf16.mxu1 %v787_v31  ;;  %v515_v31 = vld [vmem:[%s2530_s9 + $0x428] sm:$0xff] }
 0x180   : > { %1231 = vmatpush2.bf16.msra.mxu0 %v658_v35  ;;  %v596_v35 = vunpack.c.l.s8.bf16 %v396_v26 }
 0x181   : > { %1272 = vmatpush2.bf16.msra.mxu1 %v786_v36  ;;  %1232 = vmatprep.subr.bf16.mxu0 %v651_v37  ;;  %v843_v36 = vunpack.c.h.s8.bf16 %v515_v31  ;;  %v589_v37 = vunpack.c.h.s8.bf16 %v389_v32 }
 0x182   : > { %1273 = vmatprep.subr.bf16.mxu1 %v779_v38  ;;  %v514_v38 = vld [vmem:[%s2530_s9 + $0x420] sm:$0xff] }
 0x183   : > { %v842_v40 = vunpack.c.h.s8.bf16 %v514_v38  ;;  %v834_v45 = vunpack.c.l.s8.bf16 %v514_v38 }
 0x184   : > { %1233 = vmatpush2.bf16.msra.mxu0 %v650_v47  ;;  %v588_v47 = vunpack.c.h.s8.bf16 %v388_v39 }
 0x185   : > { %1274 = vmatpush2.bf16.msra.mxu1 %v778_v41  ;;  %1234 = vmatprep.subr.bf16.mxu0 %v643_v42  ;;  %v835_v41 = vunpack.c.l.s8.bf16 %v515_v31  ;;  %v581_v42 = vunpack.c.l.s8.bf16 %v389_v32 }
 0x186   : > { %1275 = vmatprep.subr.bf16.mxu1 %v771_v43  ;;  %v571_v43 = vld [vmem:[%s2530_s9 + $0x5e8] sm:$0xff] }
 0x188   : > { %1235 = vmatpush2.bf16.msra.mxu0 %v642_v46  ;;  %v580_v46 = vunpack.c.l.s8.bf16 %v388_v39 }
 0x189   : > { %1276 = vmatpush2.bf16.msra.mxu1 %v770_v48  ;;  %1286 = vmatprep.subr.bf16.mxu0 %v891_v49  ;;  %v955_v48 = vunpack.c.h.s8.bf16 %v571_v43  ;;  %v701_v49 = vunpack.c.h.s8.bf16 %v445_v44 }
 0x18a   : > { %1327 = vmatprep.subr.bf16.mxu1 %v637_v50  ;;  %v570_v50 = vld [vmem:[%s2530_s9 + $0x5e0] sm:$0xff] }
 0x18b   : > { %v992_v1 = vpop.f32.mrf.mxu0  ;;  %1237 = vmatmul.mubr.bf16.vlgmr.msra.gmra.mxu0 %v2600_v57  ;;  %v954_v54 = vunpack.c.h.s8.bf16 %v570_v50  ;;  %v946_v0 = vunpack.c.l.s8.bf16 %v570_v50 }
 0x18c   : > { %v1033_v2 = vpop.f32.mrf.mxu1  ;;  %1278 = vmatmul.mubr.bf16.vlgmr.msra.gmra.mxu1 %v2604_v58  ;;  %1287 = vmatpush1.bf16.msra.mxu0 %v890_v55  ;;  %v700_v55 = vunpack.c.h.s8.bf16 %v444_v53 }
 0x18d   : > { %v2724_v51 = vadd.f32 %v1033_v2, %v992_v1  ;;  %1328 = vmatpush1.bf16.msra.mxu1 %v636_v56  ;;  %v994_v5 = vpop.f32.mrf.mxu0  ;;  %1288 = vmatprep.subr.bf16.mxu0 %v883_v59  ;;  %v947_v56 = vunpack.c.l.s8.bf16 %v571_v43  ;;  %v693_v59 = vunpack.c.l.s8.bf16 %v445_v44  ;;  %v692_v1 = vunpack.c.l.s8.bf16 %v444_v53 }
 0x18e   : > { %v1035_v6 = vpop.f32.mrf.mxu1  ;;  %1329 = vmatprep.subr.bf16.mxu1 %v629_v60  ;;  %1318 = vmatprep.mubr.bf16.mxu0 %v2608_v3  ;;  %v563_v60 = vld [vmem:[%s2530_s9 + $0x5a8] sm:$0xff] }
 0x18f   : > { %v2728_v11 = vadd.f32 %v1035_v6, %v994_v5  ;;  %1359 = vmatprep.mubr.bf16.mxu1 %v2570_v61  ;;  %v996_v12 = vpop.f32.mrf.mxu0  ;;  %v612_v61 = vunpack.c.l.s8.bf16 %v404_v10  ;;  %v939_v2 = vunpack.c.h.s8.bf16 %v563_v60  ;;  %v436_v5 = vld [vmem:[%s2530_s9 + $0x1b0] sm:$0xff]  ;;  %v555_v10 = vld [vmem:[%s2530_s9 + $0x568] sm:$0xff] }
 0x190   : > { %v1037_v13 = vpop.f32.mrf.mxu1  ;;  %1289 = vmatpush1.bf16.msra.mxu0 %v882_v52  ;;  %v685_v52 = vunpack.c.h.s8.bf16 %v437_v63  ;;  %v429_v12 = vld [vmem:[%s2530_s9 + $0x178] sm:$0xff]  ;;  %v915_v21 = vunpack.c.l.s8.bf16 %v555_v10 }
 0x191   : > { %1330 = vmatpush1.bf16.msra.mxu1 %v628_v4  ;;  %v997_v16 = vpop.f32.mrf.mxu0  ;;  %1290 = vmatprep.subr.bf16.mxu0 %v875_v7  ;;  %v562_v4 = vld [vmem:[%s2530_s9 + $0x5a0] sm:$0xff]  ;;  %v684_v7 = vunpack.c.h.s8.bf16 %v436_v5 }
 0x192   : > { %v1038_v17 = vpop.f32.mrf.mxu1  ;;  %1331 = vmatprep.subr.bf16.mxu1 %v621_v8  ;;  %v938_v6 = vunpack.c.h.s8.bf16 %v562_v4  ;;  %v931_v8 = vunpack.c.l.s8.bf16 %v563_v60  ;;  %v930_v13 = vunpack.c.l.s8.bf16 %v562_v4  ;;  %v669_v16 = vunpack.c.h.s8.bf16 %v429_v12 }
 0x193   : > { %v554_v17 = vld [vmem:[%s2530_s9 + $0x560] sm:$0xff] }
 0x194   : > { %1291 = vmatpush1.bf16.msra.mxu0 %v874_v14  ;;  %v676_v14 = vunpack.c.l.s8.bf16 %v436_v5 }
 0x195   : > { %1332 = vmatpush1.bf16.msra.mxu1 %v620_v15  ;;  %1292 = vmatprep.subr.bf16.mxu0 %v867_v18  ;;  %v923_v15 = vunpack.c.h.s8.bf16 %v555_v10  ;;  %v428_v18 = vld [vmem:[%s2530_s9 + $0x170] sm:$0xff] }
 0x196   : > { %1333 = vmatprep.subr.bf16.mxu1 %v613_v19  ;;  %v922_v19 = vunpack.c.h.s8.bf16 %v554_v17  ;;  %v668_v20 = vunpack.c.h.s8.bf16 %v428_v18  ;;  %v660_v25 = vunpack.c.l.s8.bf16 %v428_v18 }
 0x198   : > { %1293 = vmatpush1.bf16.msra.mxu0 %v866_v22  ;;  %v661_v22 = vunpack.c.l.s8.bf16 %v429_v12 }
 0x199   : > { %1334 = vmatpush1.bf16.msra.mxu1 %v612_v61  ;;  %1294 = vmatprep.subr.bf16.mxu0 %v859_v23  ;;  %v547_v61 = vld [vmem:[%s2530_s9 + $0x528] sm:$0xff]  ;;  %v421_v23 = vld [vmem:[%s2530_s9 + $0x138] sm:$0xff] }
 0x19a   : > { %1335 = vmatprep.subr.bf16.mxu1 %v605_v24  ;;  %v914_v24 = vunpack.c.l.s8.bf16 %v554_v17  ;;  %v907_v26 = vunpack.c.h.s8.bf16 %v547_v61  ;;  %v899_v32 = vunpack.c.l.s8.bf16 %v547_v61 }
 0x19c   : > { %1295 = vmatpush1.bf16.msra.mxu0 %v858_v27  ;;  %v653_v27 = vunpack.c.h.s8.bf16 %v421_v23 }
 0x19d   : > { %1336 = vmatpush1.bf16.msra.mxu1 %v604_v28  ;;  %1296 = vmatprep.subr.bf16.mxu0 %v851_v29  ;;  %v546_v28 = vld [vmem:[%s2530_s9 + $0x520] sm:$0xff]  ;;  %v420_v29 = vld [vmem:[%s2530_s9 + $0x130] sm:$0xff] }
 0x19e   : > { %1337 = vmatprep.subr.bf16.mxu1 %v597_v30  ;;  %v906_v30 = vunpack.c.h.s8.bf16 %v546_v28  ;;  %v652_v31 = vunpack.c.h.s8.bf16 %v420_v29  ;;  %v644_v38 = vunpack.c.l.s8.bf16 %v420_v29 }
 0x1a0   : > { %1297 = vmatpush1.bf16.msra.mxu0 %v850_v33  ;;  %v645_v33 = vunpack.c.l.s8.bf16 %v421_v23 }
 0x1a1   : > { %1338 = vmatpush1.bf16.msra.mxu1 %v596_v35  ;;  %1298 = vmatprep.subr.bf16.mxu0 %v843_v36  ;;  %v477_v35 = vld [vmem:[%s2530_s9 + $0x2f8] sm:$0xff] }
 0x1a2   : > { %1339 = vmatprep.subr.bf16.mxu1 %v589_v37  ;;  %v541_v36 = vld [vmem:[%s2530_s9 + $0x4f8] sm:$0xff]  ;;  %v898_v37 = vunpack.c.l.s8.bf16 %v546_v28  ;;  %v765_v39 = vunpack.c.h.s8.bf16 %v477_v35  ;;  %v757_v44 = vunpack.c.l.s8.bf16 %v477_v35 }
 0x1a4   : > { %1299 = vmatpush1.bf16.msra.mxu0 %v842_v40  ;;  %v893_v40 = vunpack.c.h.s8.bf16 %v541_v36 }
 0x1a5   : > { %1340 = vmatpush1.bf16.msra.mxu1 %v588_v47  ;;  %1300 = vmatprep.subr.bf16.mxu0 %v835_v41  ;;  %v476_v47 = vld [vmem:[%s2530_s9 + $0x2f0] sm:$0xff] }
 0x1a6   : > { %1341 = vmatprep.subr.bf16.mxu1 %v581_v42  ;;  %v540_v41 = vld [vmem:[%s2530_s9 + $0x4f0] sm:$0xff]  ;;  %v764_v42 = vunpack.c.h.s8.bf16 %v476_v47 }
 0x1a7   : > { %v892_v43 = vunpack.c.h.s8.bf16 %v540_v41 }
 0x1a8   : > { %1301 = vmatpush1.bf16.msra.mxu0 %v834_v45  ;;  %v885_v45 = vunpack.c.l.s8.bf16 %v541_v36 }
 0x1a9   : > { %1342 = vmatpush1.bf16.msra.mxu1 %v580_v46  ;;  %1302 = vmatprep.subr.bf16.mxu0 %v955_v48  ;;  %v469_v46 = vld [vmem:[%s2530_s9 + $0x2b8] sm:$0xff] }
 0x1aa   : > { %1343 = vmatprep.subr.bf16.mxu1 %v701_v49  ;;  %v533_v48 = vld [vmem:[%s2530_s9 + $0x4b8] sm:$0xff]  ;;  %v749_v60 = vunpack.c.h.s8.bf16 %v469_v46 }
 0x1ab   : > { %v877_v63 = vunpack.c.h.s8.bf16 %v533_v48 }
 0x1ac   : > { %1303 = vmatpush2.bf16.msra.mxu0 %v954_v54  ;;  %v756_v54 = vunpack.c.l.s8.bf16 %v476_v47 }
 0x1ad   : > { %1344 = vmatpush2.bf16.msra.mxu1 %v700_v55  ;;  %1304 = vmatprep.subr.bf16.mxu0 %v947_v56  ;;  %v884_v55 = vunpack.c.l.s8.bf16 %v540_v41 }
 0x1ae   : > { %1345 = vmatprep.subr.bf16.mxu1 %v693_v59 }
 0x1b0   : > { %1305 = vmatpush2.bf16.msra.mxu0 %v946_v0  ;;  %v468_v0 = vld [vmem:[%s2530_s9 + $0x2b0] sm:$0xff] }
 0x1b1   : > { %1346 = vmatpush2.bf16.msra.mxu1 %v692_v1  ;;  %1306 = vmatprep.subr.bf16.mxu0 %v939_v2  ;;  %v532_v1 = vld [vmem:[%s2530_s9 + $0x4b0] sm:$0xff]  ;;  %v748_v2 = vunpack.c.h.s8.bf16 %v468_v0 }
 0x1b2   : > { %1347 = vmatprep.subr.bf16.mxu1 %v685_v52  ;;  %v876_v52 = vunpack.c.h.s8.bf16 %v532_v1 }
 0x1b4   : > { %1307 = vmatpush2.bf16.msra.mxu0 %v938_v6  ;;  %v741_v6 = vunpack.c.l.s8.bf16 %v469_v46 }
 0x1b5   : > { %1348 = vmatpush2.bf16.msra.mxu1 %v684_v7  ;;  %1308 = vmatprep.subr.bf16.mxu0 %v931_v8  ;;  %v869_v7 = vunpack.c.l.s8.bf16 %v533_v48  ;;  %v461_v8 = vld [vmem:[%s2530_s9 + $0x278] sm:$0xff] }
 0x1b6   : > { %1349 = vmatprep.subr.bf16.mxu1 %v677_v9  ;;  %v525_v9 = vld [vmem:[%s2530_s9 + $0x478] sm:$0xff]  ;;  %v733_v10 = vunpack.c.h.s8.bf16 %v461_v8  ;;  %v725_v17 = vunpack.c.l.s8.bf16 %v461_v8 }
 0x1b7   : > { %v861_v12 = vunpack.c.h.s8.bf16 %v525_v9  ;;  %v853_v18 = vunpack.c.l.s8.bf16 %v525_v9 }
 0x1b8   : > { %1309 = vmatpush2.bf16.msra.mxu0 %v930_v13  ;;  %v460_v13 = vld [vmem:[%s2530_s9 + $0x270] sm:$0xff] }
 0x1b9   : > { %1350 = vmatpush2.bf16.msra.mxu1 %v676_v14  ;;  %1310 = vmatprep.subr.bf16.mxu0 %v923_v15  ;;  %v524_v14 = vld [vmem:[%s2530_s9 + $0x470] sm:$0xff]  ;;  %v732_v15 = vunpack.c.h.s8.bf16 %v460_v13 }
 0x1ba   : > { %1351 = vmatprep.subr.bf16.mxu1 %v669_v16  ;;  %v860_v16 = vunpack.c.h.s8.bf16 %v524_v14 }
 0x1bc   : > { %1311 = vmatpush2.bf16.msra.mxu0 %v922_v19  ;;  %v453_v19 = vld [vmem:[%s2530_s9 + $0x238] sm:$0xff] }
 0x1bd   : > { %1352 = vmatpush2.bf16.msra.mxu1 %v668_v20  ;;  %1312 = vmatprep.subr.bf16.mxu0 %v915_v21  ;;  %v517_v20 = vld [vmem:[%s2530_s9 + $0x438] sm:$0xff]  ;;  %v724_v21 = vunpack.c.l.s8.bf16 %v460_v13  ;;  %v717_v61 = vunpack.c.h.s8.bf16 %v453_v19  ;;  %v709_v28 = vunpack.c.l.s8.bf16 %v453_v19 }
 0x1be   : > { %1353 = vmatprep.subr.bf16.mxu1 %v661_v22  ;;  %v852_v22 = vunpack.c.l.s8.bf16 %v524_v14  ;;  %v845_v23 = vunpack.c.h.s8.bf16 %v517_v20  ;;  %v837_v29 = vunpack.c.l.s8.bf16 %v517_v20 }
 0x1c0   : > { %1313 = vmatpush2.bf16.msra.mxu0 %v914_v24  ;;  %v452_v24 = vld [vmem:[%s2530_s9 + $0x230] sm:$0xff] }
 0x1c1   : > { %1354 = vmatpush2.bf16.msra.mxu1 %v660_v25  ;;  %1314 = vmatprep.subr.bf16.mxu0 %v907_v26  ;;  %v516_v25 = vld [vmem:[%s2530_s9 + $0x430] sm:$0xff]  ;;  %v716_v26 = vunpack.c.h.s8.bf16 %v452_v24 }
 0x1c2   : > { %1355 = vmatprep.subr.bf16.mxu1 %v653_v27  ;;  %v844_v27 = vunpack.c.h.s8.bf16 %v516_v25 }
 0x1c4   : > { %1315 = vmatpush2.bf16.msra.mxu0 %v906_v30  ;;  %v509_v30 = vld [vmem:[%s2530_s9 + $0x3f8] sm:$0xff] }
 0x1c5   : > { %1356 = vmatpush2.bf16.msra.mxu1 %v652_v31  ;;  %1316 = vmatprep.subr.bf16.mxu0 %v899_v32  ;;  %v573_v31 = vld [vmem:[%s2530_s9 + $0x5f8] sm:$0xff]  ;;  %v708_v32 = vunpack.c.l.s8.bf16 %v452_v24  ;;  %v829_v35 = vunpack.c.h.s8.bf16 %v509_v30  ;;  %v821_v47 = vunpack.c.l.s8.bf16 %v509_v30  ;;  %v1468_v24 = vld [vmem:[%s2536_s17 + $0x48] sm:$0xff] }
 0x1c6   : > { %1357 = vmatprep.subr.bf16.mxu1 %v645_v33  ;;  %v836_v33 = vunpack.c.l.s8.bf16 %v516_v25  ;;  %v957_v36 = vunpack.c.h.s8.bf16 %v573_v31  ;;  %v949_v41 = vunpack.c.l.s8.bf16 %v573_v31  ;;  %v1470_v25 = vld [vmem:[%s2536_s17 + $0x58] sm:$0xff] }
 0x1c8   : > { %1317 = vmatpush2.bf16.msra.mxu0 %v898_v37  ;;  %v508_v37 = vld [vmem:[%s2530_s9 + $0x3f0] sm:$0xff] }
 0x1c9   : > { %1358 = vmatpush2.bf16.msra.mxu1 %v644_v38  ;;  %1368 = vmatprep.subr.bf16.mxu0 %v765_v39  ;;  %v572_v38 = vld [vmem:[%s2530_s9 + $0x5f0] sm:$0xff]  ;;  %v828_v39 = vunpack.c.h.s8.bf16 %v508_v37 }
 0x1ca   : > { %1409 = vmatprep.subr.bf16.mxu1 %v893_v40  ;;  %v956_v40 = vunpack.c.h.s8.bf16 %v572_v38 }
 0x1cb   : > { %v1074_v49 = vpop.f32.mrf.mxu0  ;;  %1319 = vmatmul.mubr.bf16.vlgmr.msra.gmra.mxu0 %v2646_v34 }
 0x1cc   : > { %v2762_v50 = vpop.f32.mrf.mxu1  ;;  %1360 = vmatmul.mubr.bf16.vlgmr.msra.gmra.mxu1 %v2600_v57  ;;  %v2767_v53 = vadd.f32 %v1074_v49, %v2724_v51  ;;  %1369 = vmatpush1.bf16.msra.mxu0 %v764_v42  ;;  %v501_v42 = vld [vmem:[%s2530_s9 + $0x3b8] sm:$0xff]  ;;  %v500_v49 = vld [vmem:[%s2530_s9 + $0x3b0] sm:$0xff] }
 0x1cd   : > { %1410 = vmatpush1.bf16.msra.mxu1 %v892_v43  ;;  %v2769_v56 = vpop.f32.mrf.mxu0  ;;  %1370 = vmatprep.subr.bf16.mxu0 %v757_v44  ;;  %v565_v43 = vld [vmem:[%s2530_s9 + $0x5b8] sm:$0xff]  ;;  %v820_v44 = vunpack.c.l.s8.bf16 %v508_v37  ;;  %v813_v46 = vunpack.c.h.s8.bf16 %v501_v42  ;;  %v1461_v37 = vld [vmem:[%s2536_s17 + $0x10] sm:$0xff] }
 0x1ce   : > { %v2771_v59 = vpop.f32.mrf.mxu1  ;;  %1411 = vmatprep.subr.bf16.mxu1 %v885_v45  ;;  %1400 = vmatprep.mubr.bf16.mxu0 %v2572_v62  ;;  %v740_v62 = vunpack.c.l.s8.bf16 %v468_v0  ;;  %v948_v45 = vunpack.c.l.s8.bf16 %v572_v38  ;;  %v941_v48 = vunpack.c.h.s8.bf16 %v565_v43  ;;  %v933_v0 = vunpack.c.l.s8.bf16 %v565_v43  ;;  %v1472_v38 = vld [vmem:[%s2536_s17 + $0x68] sm:$0xff] }
 0x1cf   : > { %1441 = vmatprep.mubr.bf16.mxu1 %v2608_v3  ;;  %v1078_v57 = vpop.f32.mrf.mxu0  ;;  %v868_v3 = vunpack.c.l.s8.bf16 %v532_v1  ;;  %v493_v1 = vld [vmem:[%s2530_s9 + $0x378] sm:$0xff] }
 0x1d0   : > { %v1119_v51 = vpop.f32.mrf.mxu1  ;;  %1371 = vmatpush1.bf16.msra.mxu0 %v756_v54  ;;  %v564_v54 = vld [vmem:[%s2530_s9 + $0x5b0] sm:$0xff]  ;;  %v557_v57 = vld [vmem:[%s2530_s9 + $0x578] sm:$0xff]  ;;  %v789_v9 = vunpack.c.l.s8.bf16 %v493_v1 }
 0x1d1   : > { %1412 = vmatpush1.bf16.msra.mxu1 %v884_v55  ;;  %v1079_v4 = vpop.f32.mrf.mxu0  ;;  %1372 = vmatprep.subr.bf16.mxu0 %v749_v60  ;;  %v812_v55 = vunpack.c.h.s8.bf16 %v500_v49  ;;  %v940_v60 = vunpack.c.h.s8.bf16 %v564_v54  ;;  %v804_v51 = vunpack.c.l.s8.bf16 %v500_v49  ;;  %v1474_v49 = vld [vmem:[%s2536_s17 + $0x78] sm:$0xff] }
 0x1d2   : > { %v1120_v5 = vpop.f32.mrf.mxu1  ;;  %1413 = vmatprep.subr.bf16.mxu1 %v877_v63  ;;  %v805_v63 = vunpack.c.l.s8.bf16 %v501_v42  ;;  %v925_v4 = vunpack.c.h.s8.bf16 %v557_v57  ;;  %v1471_v42 = vld [vmem:[%s2536_s17 + $0x60] sm:$0xff] }
 0x1d3   : > { %v492_v5 = vld [vmem:[%s2530_s9 + $0x370] sm:$0xff] }
 0x1d4   : > { %1373 = vmatpush1.bf16.msra.mxu0 %v748_v2  ;;  %v932_v2 = vunpack.c.l.s8.bf16 %v564_v54 }
 0x1d5   : > { %1414 = vmatpush1.bf16.msra.mxu1 %v876_v52  ;;  %1374 = vmatprep.subr.bf16.mxu0 %v741_v6  ;;  %v797_v52 = vunpack.c.h.s8.bf16 %v493_v1  ;;  %v556_v6 = vld [vmem:[%s2530_s9 + $0x570] sm:$0xff]  ;;  %v1466_v1 = vld [vmem:[%s2536_s17 + $0x38] sm:$0xff] }
 0x1d6   : > { %1415 = vmatprep.subr.bf16.mxu1 %v869_v7  ;;  %v796_v7 = vunpack.c.h.s8.bf16 %v492_v5  ;;  %v924_v8 = vunpack.c.h.s8.bf16 %v556_v6  ;;  %v916_v13 = vunpack.c.l.s8.bf16 %v556_v6 }
 0x1d8   : > { %1375 = vmatpush1.bf16.msra.mxu0 %v740_v62  ;;  %v917_v62 = vunpack.c.l.s8.bf16 %v557_v57 }
 0x1d9   : > { %1416 = vmatpush1.bf16.msra.mxu1 %v868_v3  ;;  %1376 = vmatprep.subr.bf16.mxu0 %v733_v10  ;;  %v485_v3 = vld [vmem:[%s2530_s9 + $0x338] sm:$0xff] }
 0x1da   : > { %1417 = vmatprep.subr.bf16.mxu1 %v861_v12  ;;  %v549_v10 = vld [vmem:[%s2530_s9 + $0x538] sm:$0xff]  ;;  %v788_v12 = vunpack.c.l.s8.bf16 %v492_v5  ;;  %v781_v14 = vunpack.c.h.s8.bf16 %v485_v3  ;;  %v773_v20 = vunpack.c.l.s8.bf16 %v485_v3 }
 0x1dc   : > { %1377 = vmatpush1.bf16.msra.mxu0 %v732_v15  ;;  %v909_v15 = vunpack.c.h.s8.bf16 %v549_v10 }
 0x1dd   : > { %1418 = vmatpush1.bf16.msra.mxu1 %v860_v16  ;;  %1378 = vmatprep.subr.bf16.mxu0 %v725_v17  ;;  %v484_v16 = vld [vmem:[%s2530_s9 + $0x330] sm:$0xff] }
 0x1de   : > { %1419 = vmatprep.subr.bf16.mxu1 %v853_v18  ;;  %v548_v17 = vld [vmem:[%s2530_s9 + $0x530] sm:$0xff]  ;;  %v780_v18 = vunpack.c.h.s8.bf16 %v484_v16 }
 0x1df   : > { %v908_v19 = vunpack.c.h.s8.bf16 %v548_v17 }
 0x1e0   : > { %1379 = vmatpush1.bf16.msra.mxu0 %v724_v21  ;;  %v901_v21 = vunpack.c.l.s8.bf16 %v549_v10 }
 0x1e1   : > { %1420 = vmatpush1.bf16.msra.mxu1 %v852_v22  ;;  %1380 = vmatprep.subr.bf16.mxu0 %v717_v61  ;;  %v772_v22 = vunpack.c.l.s8.bf16 %v484_v16  ;;  %v900_v61 = vunpack.c.l.s8.bf16 %v548_v17 }
 0x1e2   : > { %1421 = vmatprep.subr.bf16.mxu1 %v845_v23  ;;  %v1077_v23 = vadd.f32 %v2769_v56, %v2728_v11  ;;  %v1462_v11 = vld [vmem:[%s2536_s17 + $0x18] sm:$0xff] }
 0x1e4   : > { %1381 = vmatpush1.bf16.msra.mxu0 %v716_v26  ;;  %v1467_v26 = vld [vmem:[%s2536_s17 + $0x40] sm:$0xff] }
 0x1e5   : > { %1422 = vmatpush1.bf16.msra.mxu1 %v844_v27  ;;  %1382 = vmatprep.subr.bf16.mxu0 %v709_v28  ;;  %v1451_v27 = vmax.f32 %v1077_v23, 0.0  ;;  %v1469_v28 = vld [vmem:[%s2536_s17 + $0x50] sm:$0xff] }
 0x1e6   : > { %1423 = vmatprep.subr.bf16.mxu1 %v837_v29  ;;  %v1460_v29 = vld [vmem:[%s2536_s17 + $0x8] sm:$0xff] }
 0x1e8   : > { %1383 = vmatpush1.bf16.msra.mxu0 %v708_v32 }
 0x1e9   : > { %1424 = vmatpush1.bf16.msra.mxu1 %v836_v33  ;;  %1384 = vmatprep.subr.bf16.mxu0 %v829_v35  ;;  %v1459_v35 = vld [vmem:[%s2536_s17] sm:$0xff] }
 0x1ea   : > { %1425 = vmatprep.subr.bf16.mxu1 %v957_v36 }
 0x1ec   : > { %1385 = vmatpush2.bf16.msra.mxu0 %v828_v39 }
 0x1ed   : > { %1426 = vmatpush2.bf16.msra.mxu1 %v956_v40  ;;  %1386 = vmatprep.subr.bf16.mxu0 %v821_v47 }
 0x1ee   : > { %1427 = vmatprep.subr.bf16.mxu1 %v949_v41 }
 0x1f0   : > { %1387 = vmatpush2.bf16.msra.mxu0 %v820_v44 }
 0x1f1   : > { %1428 = vmatpush2.bf16.msra.mxu1 %v948_v45  ;;  %1388 = vmatprep.subr.bf16.mxu0 %v813_v46  ;;  %v1463_v45 = vld [vmem:[%s2536_s17 + $0x20] sm:$0xff] }
 0x1f2   : > { %1429 = vmatprep.subr.bf16.mxu1 %v941_v48 }
 0x1f4   : > { %1389 = vmatpush2.bf16.msra.mxu0 %v812_v55 }
 0x1f5   : > { %1430 = vmatpush2.bf16.msra.mxu1 %v940_v60  ;;  %1390 = vmatprep.subr.bf16.mxu0 %v805_v63  ;;  %v1473_v60 = vld [vmem:[%s2536_s17 + $0x70] sm:$0xff] }
 0x1f6   : > { %1431 = vmatprep.subr.bf16.mxu1 %v933_v0 }
 0x1f8   : > { %1391 = vmatpush2.bf16.msra.mxu0 %v804_v51 }
 0x1f9   : > { %1432 = vmatpush2.bf16.msra.mxu1 %v932_v2  ;;  %1392 = vmatprep.subr.bf16.mxu0 %v797_v52  ;;  %v1465_v2 = vld [vmem:[%s2536_s17 + $0x30] sm:$0xff] }
 0x1fa   : > { %1433 = vmatprep.subr.bf16.mxu1 %v925_v4 }
 0x1fc   : > { %1393 = vmatpush2.bf16.msra.mxu0 %v796_v7 }
 0x1fd   : > { %1434 = vmatpush2.bf16.msra.mxu1 %v924_v8  ;;  %1394 = vmatprep.subr.bf16.mxu0 %v789_v9 }
 0x1fe   : > { %1435 = vmatprep.subr.bf16.mxu1 %v917_v62 }
 0x200   : > { %1395 = vmatpush2.bf16.msra.mxu0 %v788_v12 }
 0x201   : > { %1436 = vmatpush2.bf16.msra.mxu1 %v916_v13  ;;  %1396 = vmatprep.subr.bf16.mxu0 %v781_v14 }
 0x202   : > { %1437 = vmatprep.subr.bf16.mxu1 %v909_v15 }
 0x204   : > { %1397 = vmatpush2.bf16.msra.mxu0 %v780_v18 }
 0x205   : > { %1438 = vmatpush2.bf16.msra.mxu1 %v908_v19  ;;  %1398 = vmatprep.subr.bf16.mxu0 %v773_v20 }
 0x206   : > { %1439 = vmatprep.subr.bf16.mxu1 %v901_v21 }
 0x208   : > { %1399 = vmatpush2.bf16.msra.mxu0 %v772_v22 }
 0x209   : > { %1440 = vmatpush2.bf16.msra.mxu1 %v900_v61  ;;  %1503 = vmatprep.subr.mxu0 %v1468_v24 }
 0x20a   : > { %1573 = vmatprep.subr.mxu1 %v1470_v25 }
 0x20b   : > { %v1156_v30 = vpop.f32.mrf.mxu0  ;;  %1401 = vmatmul.mubr.bf16.vlgmr.msra.gmra.mxu0 %v2604_v58 }
 0x20c   : > { %v1197_v31 = vpop.f32.mrf.mxu1  ;;  %1442 = vmatmul.mubr.bf16.vlgmr.msra.gmra.mxu1 %v2646_v34  ;;  %v1157_v56 = vadd.f32 %v1156_v30, %v2762_v50  ;;  %1504 = vmatpush1.xpose.msra.mxu0 %v1467_v26  ;;  %v1450_v50 = vmax.f32 %v2767_v53, 0.0 }
 0x20d   : > { %1539 = vmatprep.mubr.f32.mxu0 %v1451_v27  ;;  %v1158_v32 = vpop.f32.mrf.mxu0  ;;  %1574 = vmatpush1.xpose.msra.mxu1 %v1469_v28 }
 0x20e   : > { %v1199_v33 = vpop.f32.mrf.mxu1  ;;  %1505 = vmatprep.subr.mxu0 %v1460_v29  ;;  %v1159_v36 = vadd.f32 %v1158_v32, %v2771_v59  ;;  %1575 = vmatprep.subr.mxu1 %v1462_v11  ;;  %v1198_v58 = vadd.f32 %v1197_v31, %v1157_v56  ;;  %v1464_v59 = vld [vmem:[%s2536_s17 + $0x28] sm:$0xff] }
 0x20f   : > { %v1160_v39 = vpop.f32.mrf.mxu0 }
 0x210   : > { %v1201_v34 = vpop.f32.mrf.mxu1  ;;  %v1200_v40 = vadd.f32 %v1199_v33, %v1159_v36  ;;  %1506 = vmatpush1.xpose.msra.mxu0 %v1459_v35  ;;  %v1452_v44 = vmax.f32 %v1198_v58, 0.0  ;;  %v1458_v35 = vld [vmem:[#allocation2] sm:$0x3] }
 0x211   : > { %v1161_v47 = vpop.f32.mrf.mxu0  ;;  %1576 = vmatpush1.xpose.msra.mxu1 %v1461_v37  ;;  %1643 = vmatprep.subr.mxu0 %v1472_v38 }
 0x212   : > { %v1202_v41 = vpop.f32.mrf.mxu1  ;;  %v1453_v43 = vmax.f32 %v1200_v40, 0.0  ;;  %1713 = vmatprep.subr.mxu1 %v1474_v49 }
 0x213   : > { %1540 = vmatmul.mubr.f32.vlgmr.msra.gmra.mxu0 %v1450_v50 }
 0x214   : > { %1609 = vmatprep.mubr.f32.mxu1 %v1453_v43  ;;  %1644 = vmatpush1.xpose.msra.mxu0 %v1471_v42 }
 0x215   : > { %1610 = vmatmul.mubr.f32.vlgmr.msra.gmra.mxu1 %v1452_v44  ;;  %1645 = vmatprep.subr.mxu0 %v1464_v59 }
 0x216   : > { %1714 = vmatpush1.xpose.msra.mxu1 %v1473_v60 }
 0x217   : > { %1715 = vmatprep.subr.mxu1 %v1466_v1 }
 0x218   : > { %1646 = vmatpush1.xpose.msra.mxu0 %v1463_v45 }
 0x21a   : > { %1716 = vmatpush1.xpose.msra.mxu1 %v1465_v2 }
 0x24b   : > { %v1238_v53 = vpop.f32.mrf.mxu0 }
 0x24c   : > { %v1279_v46 = vpop.f32.mrf.mxu1 }
 0x24d   : > { %v1280_v48 = vadd.f32 %v1279_v46, %v1238_v53  ;;  %v1240_v54 = vpop.f32.mrf.mxu0 }
 0x24e   : > { %v1281_v55 = vpop.f32.mrf.mxu1 }
 0x24f   : > { %v1242_v63 = vpop.f32.mrf.mxu0  ;;  %v1282_v5 = vadd.f32 %v1281_v55, %v1240_v54 }
 0x250   : > { %v1283_v0 = vpop.f32.mrf.mxu1 }
 0x251   : > { %v1243_v57 = vpop.f32.mrf.mxu0 }
 0x252   : > { %v1284_v51 = vpop.f32.mrf.mxu1 }
 0x28b   : > { %v1320_v52 = vpop.f32.mrf.mxu0 }
 0x28c   : > { %v1361_v4 = vpop.f32.mrf.mxu1  ;;  %v1321_v6 = vadd.f32 %v1320_v52, %v1280_v48 }
 0x28d   : > { %v1322_v7 = vpop.f32.mrf.mxu0 }
 0x28e   : > { %v1363_v8 = vpop.f32.mrf.mxu1  ;;  %v1323_v9 = vadd.f32 %v1322_v7, %v1282_v5  ;;  %v1454_v12 = vmax.f32 %v1321_v6, 0.0 }
 0x28f   : > { %v1324_v62 = vpop.f32.mrf.mxu0 }
 0x290   : > { %v1365_v3 = vpop.f32.mrf.mxu1  ;;  %v1455_v10 = vmax.f32 %v1323_v9, 0.0 }
 0x291   : > { %v1325_v13 = vpop.f32.mrf.mxu0 }
 0x292   : > { %v1366_v14 = vpop.f32.mrf.mxu1  ;;  %1679 = vmatprep.mubr.f32.mxu0 %v1455_v10 }
 0x293   : > { %1680 = vmatmul.mubr.f32.vlgmr.msra.gmra.mxu0 %v1454_v12 }
 0x2cb   : > { %v1402_v15 = vpop.f32.mrf.mxu0 }
 0x2cc   : > { %v1443_v16 = vpop.f32.mrf.mxu1  ;;  %v1403_v17 = vadd.f32 %v1402_v15, %v1361_v4 }
 0x2cd   : > { %v1404_v18 = vpop.f32.mrf.mxu0 }
 0x2ce   : > { %v1445_v19 = vpop.f32.mrf.mxu1  ;;  %v1405_v20 = vadd.f32 %v1404_v18, %v1363_v8  ;;  %v1444_v21 = vadd.f32 %v1443_v16, %v1403_v17 }
 0x2cf   : > { %v1406_v22 = vpop.f32.mrf.mxu0 }
 0x2d0   : > { %v1447_v61 = vpop.f32.mrf.mxu1  ;;  %v1446_v23 = vadd.f32 %v1445_v19, %v1405_v20  ;;  %v1456_v27 = vmax.f32 %v1444_v21, 0.0 }
 0x2d1   : > { %v1407_v24 = vpop.f32.mrf.mxu0 }
 0x2d2   : > { %v1448_v25 = vpop.f32.mrf.mxu1  ;;  %v1457_v26 = vmax.f32 %v1446_v23, 0.0 }
 0x2d3   : > { %v1541_v28 = vpop.f32.mrf.mxu0 }
 0x2d4   : > { %1749 = vmatprep.mubr.f32.mxu1 %v1457_v26 }
 0x2d5   : > { %v1543_v29 = vpop.f32.mrf.mxu0  ;;  %v1611_v30 = vpop.f32.mrf.mxu1  ;;  %1750 = vmatmul.mubr.f32.vlgmr.msra.gmra.mxu1 %v1456_v27 }
 0x2d6   : > { %v1612_v31 = vadd.f32 %v1611_v30, %v1541_v28 }
 0x2d7   : > { %v1613_v11 = vpop.f32.mrf.mxu1 }
 0x353   : > { %v1681_v56 = vpop.f32.mrf.mxu0 }
 0x354   : > { %v1682_v32 = vadd.f32 %v1681_v56, %v1612_v31 }
 0x355   : > { %v1683_v33 = vpop.f32.mrf.mxu0 }
 0x395   : > { %v1751_v36 = vpop.f32.mrf.mxu1 }
 0x396   : > { %v1752_v37 = vadd.f32 %v1751_v36, %v1682_v32  ;;  %1761 = sbr.rel (%p1983_p13) target bundleno = 1130 (0x46a), region = 72 }
 0x397   : > { %v1753_v38 = vpop.f32.mrf.mxu1 }
 0x398   : > { %v1755_v58 = vadd.f32 %v1752_v37, %v1458_v35 }
 0x39a   : > { %1757 = vst.msk [vmem:[#allocation2] sm:$0x3] %vm1756_vm1, %v1755_v58 }
 0x39b   : > { %v1773_v39 = vld [vmem:[%s2860_s4 + $0x8] sm:$0xff]  ;;  %v2311_v40 = vmov 0.0   ;;  %v1772_v50 = vld [vmem:[%s2860_s4] sm:$0xff]  ;;  %vm2312_vm2 = vmmov 0   ;;  %vm1781_vm3 = vcmask 130048   ;;  %vm1855_vm4 = vcmask 58368  }
 0x39c   : > { %1996 = vmatprep.subr.mxu0 %v2311_v40  ;;  %2000 = vmatprep.mubr.msk.f32.mxu0 %vm2312_vm2, %v2311_v40  ;;  %v1984_v47 = vld [vmem:[#allocation9] ss:$0 sm:$0xff]  ;;  %v1985_v43 = vld [vmem:[#allocation11] ss:$0 sm:$0xff] }
 0x39d   : > { %1997 = vmatpush3.msra.mxu0 %v1773_v39 }
 0x39e   : > { %1998 = vmatprep.subr.mxu0 %v2311_v40 }
 0x39f   : > { %1999 = vmatpush3.msra.mxu0 %v1772_v50 }
 0x3a1   : > { %v1762_v34 = vld [vmem:[#allocation2] sm:$0x3] }
 0x3a2   : > { %v1770_v41 = vadd.f32 %v1984_v47, %v1762_v34 }
 0x3a4   : > { %v1771_v42 = vmax.f32 %v1770_v41, 0.0 }
 0x3a6   : > { %2001 = vmatmul.mubr.msk.f32.vlgmr.msra.gmra.mxu0 %vm1781_vm3, %v1771_v42 }
 0x466   : > { %v1851_v59 = vpop.f32.mrf.mxu0 }
 0x467   : > { %v1852_v44 = vadd.f32 %v1985_v43, %v1851_v59 }
 0x468   : > { %v2002_v45 = vpop.f32.mrf.mxu0 }
 0x469   : > { %1856 = vst.msk [vmem:[#allocation12] sm:$0x3] %vm1855_vm4, %v1852_v44 }
 0x46a PF: > { %p2049_p10 = scmp.eq.s32.totalorder %s2368_s25, 3  ;;  %s2313_s11 = smov [#allocation12]  }
 0x46b   : > { %s1864_s30 = sshll.u32 %s2313_s11, 4  ;;  %s1865_s30 = int_to_ptr.vmem [resolvable:$true] %s1864_s30 }
 0x46c   : > { %s2229_s1 = scalar_lea.vmem %s1865_s30, 32  ;;  %p2236_p6 = scmp.lt.s32.totalorder %s1865_s30, %s1865_s30 }
 0x46d   : > { %p2230_p1 = scmp.ne.s32.totalorder %s1865_s30, %s2229_s1  ;;  %p2237_p7 = scmp.lt.s32.totalorder %s2229_s1, %s2229_s1 }
 0x46f   : > { %p2231_p12 = pnand %p2230_p1, %p2049_p10  ;;  %p2238_p5 = por %p2237_p7, %p2236_p6 }
 0x471   : > { %p2232_p3 = pneg %p2231_p12 }
 0x473   : > { %p2239_p11 = pnand %p2238_p5, %p2232_p3 }
 0x475   : > { %2242 = shalt.err (!%p2239_p11)
}
 0x476   : > { %2022 = dma.vmem_to_hbm [thread:$0]  (%p2049_p10), %s1865_s30, 32, %s2862_s6, [#allocation5]  }
 0x477   : > { %2282 = dma.done.wait (%p2049_p10), [#allocation5], 32  }
 0x478   : > { %2284 = vsyncadd (%p2049_p10), [#allocation5], 4294967264 }
 0x479 PF: > { %s2888_s28 = sld [smem:[#allocation17_spill]]  ;;  %p19_p4 = scmp.ge.s32.totalorder %s2371_s26, 6  }
 0x47a   : > { %s2889_s23 = sld [smem:[#allocation18_spill]]  ;;  %s2890_s21 = smov %s2291_s22 }
 0x47b   : > { %s2892_s24 = smov %s2371_s26  ;;  %21 = sbr.rel (!%p19_p4) target bundleno = 9 (0x9), region = 113 }
 0x47f   : > { %s2891_s22 = smov %s2888_s28 }
 0x480   :  { %1877 = vsyncpa [#allocation4], 1 }
 0x481   :  { %1879 = vsyncpa [#allocation4 + $0x1], 1 }
 0x482   :  { %1880 = vsyncpa [#allocation7], 1 }
 0x483   :  { %1882 = vsyncpa [#allocation7 + $0x1], 1 }
 0x484   :  { %1883 = vsyncpa [#allocation10], 1 }
 0x485   :  { %1884 = vsyncpa [#allocation5], 1 }
 0x486   :  { %1886 = vsyncpa [#allocation5 + $0x1], 1 }

</bundles_post_ra>
